<compile_context>
chip_gen: v6e
topology: v6e:2x2x1
jax: 0.10.0
libtpu: 0.0.40
codegen_flags: <defaults>
</compile_context>

<pallas_src>
import numpy as np
import jax
import jax.numpy as jnp
from jax import lax
from jax.experimental import pallas as pl
from jax.experimental.pallas import tpu as pltpu


def _elu(v):
    # ELU(alpha=1): x if x > 0 else exp(x) - 1
    return jnp.where(v > 0, v, jnp.exp(jnp.minimum(v, 0.0)) - 1.0)


def _down_res_bloc_kernel(x_ref, w1_ref, w2_ref, wm_ref, bias_ref,
                          g1_ref, b1_ref, g2_ref, b2_ref,
                          pmean_ref, sodd_ref,
                          pf_ref, nf_ref, ph_ref, nh_ref,
                          out_ref):
    n_rows, H, L = x_ref.shape
    Hq = H // 2
    R = n_rows * H
    Rq = n_rows * Hq

    def conv3x3(v2d, wf_ref, prev_ref, next_ref):
        # 'SAME' 3x3 conv as a single big MXU matmul (K = 3*L):
        #   ky taps  -> exact 0/1 row-shift matmuls (zero H-halo baked into the mats),
        #   kx taps + W zero-padding -> baked into the block-banded fused weight.
        prev = jnp.dot(prev_ref[...], v2d, preferred_element_type=jnp.float32)
        nxt = jnp.dot(next_ref[...], v2d, preferred_element_type=jnp.float32)
        op = jnp.concatenate([prev, v2d, nxt], axis=1)           # (rows, 3*L)
        return jnp.dot(op, wf_ref[...], preferred_element_type=jnp.float32)

    def batchnorm(v, gp_ref, bp_ref):
        # Training-mode BN over (N, H, W), eps=1e-5; single-pass sum / sum-of-squares.
        # pmean_ref maps per-lane sums to per-lane channel means (1/count included);
        # gamma/beta arrive pre-broadcast per packed lane -> only 2 matmuls per BN.
        # (E[x^2]-mean^2 in f32 is benign here: post-conv activations have |mean|~std.)
        s0 = jnp.sum(v, axis=0, keepdims=True)                   # (1, L)
        s1 = jnp.sum(v * v, axis=0, keepdims=True)               # (1, L)
        mean_p = jnp.dot(s0, pmean_ref[...], preferred_element_type=jnp.float32)
        msq_p = jnp.dot(s1, pmean_ref[...], preferred_element_type=jnp.float32)
        var_p = msq_p - mean_p * mean_p
        scale_p = lax.rsqrt(var_p + 1e-5) * gp_ref[...]          # (1, L)
        shift_p = bp_ref[...] - mean_p * scale_p
        return v * scale_p + shift_p

    def hpair_max(v2d):
        v4 = v2d.reshape(n_rows, Hq, 2, L)
        return jnp.maximum(v4[:, :, 0, :], v4[:, :, 1, :]).reshape(Rq, L)

    x2d = x_ref[...].reshape(R, L)

    # ---- body: conv -> ELU -> BN -> conv -> ELU -> BN (all in registers) ----
    y = batchnorm(_elu(conv3x3(x2d, w1_ref, pf_ref, nf_ref)), g1_ref, b1_ref)
    y = batchnorm(_elu(conv3x3(y, w2_ref, pf_ref, nf_ref)), g2_ref, b2_ref)

    # ---- 2x2 max-pool of body and skip (batched), then merge conv + bias ----
    # H pairs: aligned row split + max. W pairs: one odd->even gather matmul + max;
    # the even-column selection is folded into the merge conv's banded weights, so
    # `pooled` stays at full 128-lane width (odd-x lanes carry ignored garbage).
    stacked = jnp.concatenate([hpair_max(y), hpair_max(x2d)], axis=0)    # (2*Rq, L)
    shifted = jnp.dot(stacked, sodd_ref[...], preferred_element_type=jnp.float32)
    q = jnp.maximum(stacked, shifted)
    pooled = q[:Rq, :] + q[Rq:, :]                                       # (Rq, L)

    # lane-dense (Rq, pack*Wq*Cout) output slab
    out_ref[...] = conv3x3(pooled, wm_ref, ph_ref, nh_ref) + bias_ref[...]


# ---------------- host-side helpers (trace-time constants / tiny XLA ops) ----------------

def _fused_conv_weights(w, width, pack):
    # w: (3,3,Cin,Cout) HWIO -> (3*pack*width*Cin, pack*width*Cout): fused over ky,
    # block-banded over kx (W zero-padding included), block-diagonal over packed images.
    cin, cout = int(w.shape[2]), int(w.shape[3])
    xi = np.arange(width)[:, None, None]
    xo = np.arange(width)[None, :, None]
    kx = np.arange(3)[None, None, :]
    mask = (xi == xo + kx - 1).astype(np.float32)                # (W, W, 3)
    eye = np.eye(pack, dtype=np.float32)
    b = jnp.einsum('abk,pq,jkio->jpaiqbo',
                   jnp.asarray(mask), jnp.asarray(eye), w.astype(jnp.float32))
    return b.reshape(3 * pack * width * cin, pack * width * cout)


def _fused_merge_weights(w, width, pack):
    # Merge conv reads the pooled image stored at FULL lane width (valid data only at
    # even x positions): xi = 2*(xo + kx - 1); odd-x lanes get zero weights.
    cin, cout = int(w.shape[2]), int(w.shape[3])
    wq = width // 2
    xi = np.arange(width)[:, None, None]
    xo = np.arange(wq)[None, :, None]
    kx = np.arange(3)[None, None, :]
    src = xo + kx - 1
    mask = ((xi == 2 * src) & (src >= 0) & (src < wq)).astype(np.float32)   # (W, Wq, 3)
    eye = np.eye(pack, dtype=np.float32)
    b = jnp.einsum('abk,pq,jkio->jpaiqbo',
                   jnp.asarray(mask), jnp.asarray(eye), w.astype(jnp.float32))
    return b.reshape(3 * pack * width * cin, pack * wq * cout)


def _channel_mean_projector(width, c, pack, count):
    # P[l', l] = 1/count if lanes l' and l carry the same channel (rm @ ex fused).
    L = pack * width * c
    ch = np.arange(L) % c
    return jnp.asarray((ch[:, None] == ch[None, :]).astype(np.float32) / float(count))


def _odd_to_even_gather(width, c, pack):
    # 0/1 matrix moving each odd-x lane onto its even-x partner (other columns zero).
    L = pack * width * c
    lane = np.arange(L)
    x = (lane // c) % width
    s = np.zeros((L, L), np.float32)
    odd = lane[(x % 2) == 1]
    s[odd, odd - c] = 1.0
    return jnp.asarray(s)


def _row_shift_mats(n_img, rows):
    # prev[y, y-1] = 1 / next[y, y+1] = 1 within each image (zero halo at boundaries).
    R = n_img * rows
    r = np.arange(R)
    prev = np.zeros((R, R), np.float32)
    nxt = np.zeros((R, R), np.float32)
    ok = (r % rows) > 0
    prev[r[ok], r[ok] - 1] = 1.0
    ok = (r % rows) < rows - 1
    nxt[r[ok], r[ok] + 1] = 1.0
    return jnp.asarray(prev), jnp.asarray(nxt)


@jax.jit
def down_res_bloc(x_nchw, params):
    w1, w2, wm, bm, g1, b1, g2, b2 = params
    N, C, H, W = x_nchw.shape
    Hq, Wq = H // 2, W // 2
    Cout = int(wm.shape[-1])

    # lane packing: fold `pack` batch images into the lane axis to reach >=128 lanes
    lanes_per_img = W * C
    want = max(1, -(-128 // lanes_per_img))
    pack = 1
    for p in range(min(N, want), 0, -1):
        if N % p == 0:
            pack = p
            break
    n_rows = N // pack
    L = pack * lanes_per_img
    Lout = pack * Wq * Cout

    # NCHW -> packed (n_rows, H, pack*W*C); the packing rides on the single transpose
    xp = x_nchw.astype(jnp.float32).reshape(n_rows, pack, C, H, W)
    xp = jnp.transpose(xp, (0, 3, 1, 4, 2)).reshape(n_rows, H, L)

    w1f = _fused_conv_weights(w1, W, pack)
    w2f = _fused_conv_weights(w2, W, pack)
    wmf = _fused_merge_weights(wm, W, pack)
    bias_p = jnp.tile(bm.reshape(1, Cout).astype(jnp.float32), (1, pack * Wq))
    g1p = jnp.tile(g1.reshape(1, C).astype(jnp.float32), (1, pack * W))
    b1p = jnp.tile(b1.reshape(1, C).astype(jnp.float32), (1, pack * W))
    g2p = jnp.tile(g2.reshape(1, C).astype(jnp.float32), (1, pack * W))
    b2p = jnp.tile(b2.reshape(1, C).astype(jnp.float32), (1, pack * W))
    pmean = _channel_mean_projector(W, C, pack, N * H * W)
    sodd = _odd_to_even_gather(W, C, pack)
    pf, nf = _row_shift_mats(n_rows, H)
    ph, nh = _row_shift_mats(n_rows, Hq)

    vmem = pl.BlockSpec(memory_space=pltpu.MemorySpace.VMEM)
    out2d = pl.pallas_call(
        _down_res_bloc_kernel,
        out_shape=jax.ShapeDtypeStruct((n_rows * Hq, Lout), jnp.float32),
        in_specs=[vmem] * 15,
        out_specs=vmem,
    )(xp, w1f, w2f, wmf, bias_p, g1p, b1p, g2p, b2p,
      pmean, sodd, pf, nf, ph, nh)

    # lane-dense slab -> NCHW (the un-packing rides on the single output transpose)
    out = out2d.reshape(n_rows, Hq, pack, Wq, Cout)
    return jnp.transpose(out, (0, 2, 4, 1, 3)).reshape(N, Cout, Hq, Wq)


def reference(x_nchw, params):
    # pure-JAX reference of the same forward semantics
    w1, w2, wm, bm, g1, b1, g2, b2 = params
    x = jnp.transpose(x_nchw, (0, 2, 3, 1)).astype(jnp.float32)

    def conv(v, w, bias=None):
        o = lax.conv_general_dilated(v, w, (1, 1), 'SAME',
                                     dimension_numbers=('NHWC', 'HWIO', 'NHWC'))
        return o if bias is None else o + bias.reshape(1, 1, 1, -1)

    def bn(v, g, b):
        m = v.mean(axis=(0, 1, 2), keepdims=True)
        var = ((v - m) ** 2).mean(axis=(0, 1, 2), keepdims=True)
        return (v - m) * lax.rsqrt(var + 1e-5) * g.reshape(1, 1, 1, -1) + b.reshape(1, 1, 1, -1)

    def mp(v):
        n, h, w_, c = v.shape
        return v.reshape(n, h // 2, 2, w_ // 2, 2, c).max(axis=(2, 4))

    y = bn(_elu(conv(x, w1)), g1, b1)
    y = bn(_elu(conv(y, w2)), g2, b2)
    o = conv(mp(x) + mp(y), wm, bm)
    return jnp.transpose(o, (0, 3, 1, 2))


if __name__ == "__main__":
    N, Cin, H, W = 2, 4, 16, 16
    Cout = 8

    key = jax.random.PRNGKey(0)
    kx, k1, k2, k3, k4 = jax.random.split(key, 5)
    x = jax.random.normal(kx, (N, Cin, H, W), jnp.float32)

    scale = 1.0 / (3.0 * float(Cin) ** 0.5)
    w1 = jax.random.normal(k1, (3, 3, Cin, Cin), jnp.float32) * scale   # HWIO
    w2 = jax.random.normal(k2, (3, 3, Cin, Cin), jnp.float32) * scale
    wm = jax.random.normal(k3, (3, 3, Cin, Cout), jnp.float32) * scale
    bm = jax.random.normal(k4, (1, Cout), jnp.float32) * 0.1
    g1 = jnp.ones((1, Cin), jnp.float32)
    b1 = jnp.zeros((1, Cin), jnp.float32)
    g2 = jnp.ones((1, Cin), jnp.float32)
    b2 = jnp.zeros((1, Cin), jnp.float32)
    params = (w1, w2, wm, bm, g1, b1, g2, b2)

    out = jax.block_until_ready(down_res_bloc(x, params))
    ref = reference(x, params)

    assert out.shape == (N, Cout, H // 2, W // 2), out.shape
    max_err = float(jnp.max(jnp.abs(out - ref)))
    assert jnp.allclose(out, ref, rtol=1e-3, atol=1e-3), max_err
    print("KERNEL_OK")
</pallas_src>

<mosaic_0001>
module attributes {stable_mosaic.version = 11 : i64} {
  func.func @_down_res_bloc_kernel(%arg0: memref<1x16x128xf32, #tpu.memory_space<vmem>>, %arg1: memref<384x128xf32, #tpu.memory_space<vmem>>, %arg2: memref<384x128xf32, #tpu.memory_space<vmem>>, %arg3: memref<384x128xf32, #tpu.memory_space<vmem>>, %arg4: memref<1x128xf32, #tpu.memory_space<vmem>>, %arg5: memref<1x128xf32, #tpu.memory_space<vmem>>, %arg6: memref<1x128xf32, #tpu.memory_space<vmem>>, %arg7: memref<1x128xf32, #tpu.memory_space<vmem>>, %arg8: memref<1x128xf32, #tpu.memory_space<vmem>>, %arg9: memref<128x128xf32, #tpu.memory_space<vmem>>, %arg10: memref<128x128xf32, #tpu.memory_space<vmem>>, %arg11: memref<16x16xf32, #tpu.memory_space<vmem>>, %arg12: memref<16x16xf32, #tpu.memory_space<vmem>>, %arg13: memref<8x8xf32, #tpu.memory_space<vmem>>, %arg14: memref<8x8xf32, #tpu.memory_space<vmem>>, %arg15: memref<8x128xf32, #tpu.memory_space<vmem>>) attributes {dimension_semantics = [], scalar_prefetch = 0 : i64, scratch_operands = 0 : i64, tpu.core_type = #tpu.core_type<tc>} {
    %c0 = arith.constant 0 : index
    %c0_0 = arith.constant 0 : index
    %c0_1 = arith.constant 0 : index
    %0 = vector.load %arg0[%c0, %c0_0, %c0_1] : memref<1x16x128xf32, #tpu.memory_space<vmem>>, vector<1x16x128xf32>
    %1 = vector.shape_cast %0 : vector<1x16x128xf32> to vector<16x128xf32>
    %c0_2 = arith.constant 0 : index
    %c0_3 = arith.constant 0 : index
    %2 = vector.load %arg11[%c0_2, %c0_3] : memref<16x16xf32, #tpu.memory_space<vmem>>, vector<16x16xf32>
    %cst = arith.constant dense<0.000000e+00> : vector<16x128xf32>
    %3 = tpu.matmul %2, %1, %cst {dimension_numbers = #tpu.dot_dimension_numbers<[1], [0], [0], [1], [0, 0, 1, 1], [], []>} : vector<16x16xf32>, vector<16x128xf32>, vector<16x128xf32> -> vector<16x128xf32>
    %c0_4 = arith.constant 0 : index
    %c0_5 = arith.constant 0 : index
    %4 = vector.load %arg12[%c0_4, %c0_5] : memref<16x16xf32, #tpu.memory_space<vmem>>, vector<16x16xf32>
    %cst_6 = arith.constant dense<0.000000e+00> : vector<16x128xf32>
    %5 = tpu.matmul %4, %1, %cst_6 {dimension_numbers = #tpu.dot_dimension_numbers<[1], [0], [0], [1], [0, 0, 1, 1], [], []>} : vector<16x16xf32>, vector<16x128xf32>, vector<16x128xf32> -> vector<16x128xf32>
    %6 = tpu.concatenate %3, %1, %5 in 1 : vector<16x128xf32>, vector<16x128xf32>, vector<16x128xf32> -> vector<16x384xf32>
    %c0_7 = arith.constant 0 : index
    %c0_8 = arith.constant 0 : index
    %7 = vector.load %arg1[%c0_7, %c0_8] : memref<384x128xf32, #tpu.memory_space<vmem>>, vector<384x128xf32>
    %cst_9 = arith.constant dense<0.000000e+00> : vector<16x128xf32>
    %8 = tpu.matmul %6, %7, %cst_9 {dimension_numbers = #tpu.dot_dimension_numbers<[1], [0], [0], [1], [0, 0, 1, 1], [], []>} : vector<16x384xf32>, vector<384x128xf32>, vector<16x128xf32> -> vector<16x128xf32>
    %cst_10 = arith.constant 0.000000e+00 : f32
    %9 = vector.broadcast %cst_10 : f32 to vector<16x128xf32>
    %10 = arith.cmpf ogt, %8, %9 : vector<16x128xf32>
    %cst_11 = arith.constant 0.000000e+00 : f32
    %11 = vector.broadcast %cst_11 : f32 to vector<16x128xf32>
    %12 = arith.minimumf %8, %11 : vector<16x128xf32>
    %13 = math.exp %12 : vector<16x128xf32>
    %cst_12 = arith.constant 1.000000e+00 : f32
    %14 = vector.broadcast %cst_12 : f32 to vector<16x128xf32>
    %15 = arith.subf %13, %14 : vector<16x128xf32>
    %16 = arith.select %10, %8, %15 : vector<16x128xi1>, vector<16x128xf32>
    %cst_13 = arith.constant dense<0.000000e+00> : vector<128xf32>
    %17 = vector.multi_reduction <add>, %16, %cst_13 [0] : vector<16x128xf32> to vector<128xf32>
    %18 = vector.shape_cast %17 : vector<128xf32> to vector<1x128xf32>
    %19 = arith.mulf %16, %16 : vector<16x128xf32>
    %cst_14 = arith.constant dense<0.000000e+00> : vector<128xf32>
    %20 = vector.multi_reduction <add>, %19, %cst_14 [0] : vector<16x128xf32> to vector<128xf32>
    %21 = vector.shape_cast %20 : vector<128xf32> to vector<1x128xf32>
    %c0_15 = arith.constant 0 : index
    %c0_16 = arith.constant 0 : index
    %22 = vector.load %arg9[%c0_15, %c0_16] : memref<128x128xf32, #tpu.memory_space<vmem>>, vector<128x128xf32>
    %cst_17 = arith.constant dense<0.000000e+00> : vector<1x128xf32>
    %23 = tpu.matmul %18, %22, %cst_17 {dimension_numbers = #tpu.dot_dimension_numbers<[1], [0], [0], [1], [0, 0, 1, 1], [], []>} : vector<1x128xf32>, vector<128x128xf32>, vector<1x128xf32> -> vector<1x128xf32>
    %c0_18 = arith.constant 0 : index
    %c0_19 = arith.constant 0 : index
    %24 = vector.load %arg9[%c0_18, %c0_19] : memref<128x128xf32, #tpu.memory_space<vmem>>, vector<128x128xf32>
    %cst_20 = arith.constant dense<0.000000e+00> : vector<1x128xf32>
    %25 = tpu.matmul %21, %24, %cst_20 {dimension_numbers = #tpu.dot_dimension_numbers<[1], [0], [0], [1], [0, 0, 1, 1], [], []>} : vector<1x128xf32>, vector<128x128xf32>, vector<1x128xf32> -> vector<1x128xf32>
    %26 = arith.mulf %23, %23 : vector<1x128xf32>
    %27 = arith.subf %25, %26 : vector<1x128xf32>
    %cst_21 = arith.constant 9.99999974E-6 : f32
    %28 = vector.broadcast %cst_21 : f32 to vector<1x128xf32>
    %29 = arith.addf %27, %28 : vector<1x128xf32>
    %30 = math.rsqrt %29 : vector<1x128xf32>
    %c0_22 = arith.constant 0 : index
    %c0_23 = arith.constant 0 : index
    %31 = vector.load %arg5[%c0_22, %c0_23] : memref<1x128xf32, #tpu.memory_space<vmem>>, vector<1x128xf32>
    %32 = arith.mulf %30, %31 : vector<1x128xf32>
    %c0_24 = arith.constant 0 : index
    %c0_25 = arith.constant 0 : index
    %33 = vector.load %arg6[%c0_24, %c0_25] : memref<1x128xf32, #tpu.memory_space<vmem>>, vector<1x128xf32>
    %34 = arith.mulf %23, %32 : vector<1x128xf32>
    %35 = arith.subf %33, %34 : vector<1x128xf32>
    %36 = vector.broadcast %32 : vector<1x128xf32> to vector<16x128xf32>
    %37 = arith.mulf %16, %36 : vector<16x128xf32>
    %38 = vector.broadcast %35 : vector<1x128xf32> to vector<16x128xf32>
    %39 = arith.addf %37, %38 : vector<16x128xf32>
    %c0_26 = arith.constant 0 : index
    %c0_27 = arith.constant 0 : index
    %40 = vector.load %arg11[%c0_26, %c0_27] : memref<16x16xf32, #tpu.memory_space<vmem>>, vector<16x16xf32>
    %cst_28 = arith.constant dense<0.000000e+00> : vector<16x128xf32>
    %41 = tpu.matmul %40, %39, %cst_28 {dimension_numbers = #tpu.dot_dimension_numbers<[1], [0], [0], [1], [0, 0, 1, 1], [], []>} : vector<16x16xf32>, vector<16x128xf32>, vector<16x128xf32> -> vector<16x128xf32>
    %c0_29 = arith.constant 0 : index
    %c0_30 = arith.constant 0 : index
    %42 = vector.load %arg12[%c0_29, %c0_30] : memref<16x16xf32, #tpu.memory_space<vmem>>, vector<16x16xf32>
    %cst_31 = arith.constant dense<0.000000e+00> : vector<16x128xf32>
    %43 = tpu.matmul %42, %39, %cst_31 {dimension_numbers = #tpu.dot_dimension_numbers<[1], [0], [0], [1], [0, 0, 1, 1], [], []>} : vector<16x16xf32>, vector<16x128xf32>, vector<16x128xf32> -> vector<16x128xf32>
    %44 = tpu.concatenate %41, %39, %43 in 1 : vector<16x128xf32>, vector<16x128xf32>, vector<16x128xf32> -> vector<16x384xf32>
    %c0_32 = arith.constant 0 : index
    %c0_33 = arith.constant 0 : index
    %45 = vector.load %arg2[%c0_32, %c0_33] : memref<384x128xf32, #tpu.memory_space<vmem>>, vector<384x128xf32>
    %cst_34 = arith.constant dense<0.000000e+00> : vector<16x128xf32>
    %46 = tpu.matmul %44, %45, %cst_34 {dimension_numbers = #tpu.dot_dimension_numbers<[1], [0], [0], [1], [0, 0, 1, 1], [], []>} : vector<16x384xf32>, vector<384x128xf32>, vector<16x128xf32> -> vector<16x128xf32>
    %cst_35 = arith.constant 0.000000e+00 : f32
    %47 = vector.broadcast %cst_35 : f32 to vector<16x128xf32>
    %48 = arith.cmpf ogt, %46, %47 : vector<16x128xf32>
    %cst_36 = arith.constant 0.000000e+00 : f32
    %49 = vector.broadcast %cst_36 : f32 to vector<16x128xf32>
    %50 = arith.minimumf %46, %49 : vector<16x128xf32>
    %51 = math.exp %50 : vector<16x128xf32>
    %cst_37 = arith.constant 1.000000e+00 : f32
    %52 = vector.broadcast %cst_37 : f32 to vector<16x128xf32>
    %53 = arith.subf %51, %52 : vector<16x128xf32>
    %54 = arith.select %48, %46, %53 : vector<16x128xi1>, vector<16x128xf32>
    %cst_38 = arith.constant dense<0.000000e+00> : vector<128xf32>
    %55 = vector.multi_reduction <add>, %54, %cst_38 [0] : vector<16x128xf32> to vector<128xf32>
    %56 = vector.shape_cast %55 : vector<128xf32> to vector<1x128xf32>
    %57 = arith.mulf %54, %54 : vector<16x128xf32>
    %cst_39 = arith.constant dense<0.000000e+00> : vector<128xf32>
    %58 = vector.multi_reduction <add>, %57, %cst_39 [0] : vector<16x128xf32> to vector<128xf32>
    %59 = vector.shape_cast %58 : vector<128xf32> to vector<1x128xf32>
    %c0_40 = arith.constant 0 : index
    %c0_41 = arith.constant 0 : index
    %60 = vector.load %arg9[%c0_40, %c0_41] : memref<128x128xf32, #tpu.memory_space<vmem>>, vector<128x128xf32>
    %cst_42 = arith.constant dense<0.000000e+00> : vector<1x128xf32>
    %61 = tpu.matmul %56, %60, %cst_42 {dimension_numbers = #tpu.dot_dimension_numbers<[1], [0], [0], [1], [0, 0, 1, 1], [], []>} : vector<1x128xf32>, vector<128x128xf32>, vector<1x128xf32> -> vector<1x128xf32>
    %c0_43 = arith.constant 0 : index
    %c0_44 = arith.constant 0 : index
    %62 = vector.load %arg9[%c0_43, %c0_44] : memref<128x128xf32, #tpu.memory_space<vmem>>, vector<128x128xf32>
    %cst_45 = arith.constant dense<0.000000e+00> : vector<1x128xf32>
    %63 = tpu.matmul %59, %62, %cst_45 {dimension_numbers = #tpu.dot_dimension_numbers<[1], [0], [0], [1], [0, 0, 1, 1], [], []>} : vector<1x128xf32>, vector<128x128xf32>, vector<1x128xf32> -> vector<1x128xf32>
    %64 = arith.mulf %61, %61 : vector<1x128xf32>
    %65 = arith.subf %63, %64 : vector<1x128xf32>
    %cst_46 = arith.constant 9.99999974E-6 : f32
    %66 = vector.broadcast %cst_46 : f32 to vector<1x128xf32>
    %67 = arith.addf %65, %66 : vector<1x128xf32>
    %68 = math.rsqrt %67 : vector<1x128xf32>
    %c0_47 = arith.constant 0 : index
    %c0_48 = arith.constant 0 : index
    %69 = vector.load %arg7[%c0_47, %c0_48] : memref<1x128xf32, #tpu.memory_space<vmem>>, vector<1x128xf32>
    %70 = arith.mulf %68, %69 : vector<1x128xf32>
    %c0_49 = arith.constant 0 : index
    %c0_50 = arith.constant 0 : index
    %71 = vector.load %arg8[%c0_49, %c0_50] : memref<1x128xf32, #tpu.memory_space<vmem>>, vector<1x128xf32>
    %72 = arith.mulf %61, %70 : vector<1x128xf32>
    %73 = arith.subf %71, %72 : vector<1x128xf32>
    %74 = vector.broadcast %70 : vector<1x128xf32> to vector<16x128xf32>
    %75 = arith.mulf %54, %74 : vector<16x128xf32>
    %76 = vector.broadcast %73 : vector<1x128xf32> to vector<16x128xf32>
    %77 = arith.addf %75, %76 : vector<16x128xf32>
    %78 = vector.shape_cast %77 : vector<16x128xf32> to vector<1x8x2x128xf32>
    %79 = vector.extract_strided_slice %78 {offsets = [0, 0, 0, 0], sizes = [1, 8, 1, 128], strides = [1, 1, 1, 1]} : vector<1x8x2x128xf32> to vector<1x8x1x128xf32>
    %80 = vector.shape_cast %79 : vector<1x8x1x128xf32> to vector<1x8x128xf32>
    %81 = vector.extract_strided_slice %78 {offsets = [0, 0, 1, 0], sizes = [1, 8, 1, 128], strides = [1, 1, 1, 1]} : vector<1x8x2x128xf32> to vector<1x8x1x128xf32>
    %82 = vector.shape_cast %81 : vector<1x8x1x128xf32> to vector<1x8x128xf32>
    %83 = arith.maximumf %80, %82 : vector<1x8x128xf32>
    %84 = vector.shape_cast %83 : vector<1x8x128xf32> to vector<8x128xf32>
    %85 = vector.shape_cast %1 : vector<16x128xf32> to vector<1x8x2x128xf32>
    %86 = vector.extract_strided_slice %85 {offsets = [0, 0, 0, 0], sizes = [1, 8, 1, 128], strides = [1, 1, 1, 1]} : vector<1x8x2x128xf32> to vector<1x8x1x128xf32>
    %87 = vector.shape_cast %86 : vector<1x8x1x128xf32> to vector<1x8x128xf32>
    %88 = vector.extract_strided_slice %85 {offsets = [0, 0, 1, 0], sizes = [1, 8, 1, 128], strides = [1, 1, 1, 1]} : vector<1x8x2x128xf32> to vector<1x8x1x128xf32>
    %89 = vector.shape_cast %88 : vector<1x8x1x128xf32> to vector<1x8x128xf32>
    %90 = arith.maximumf %87, %89 : vector<1x8x128xf32>
    %91 = vector.shape_cast %90 : vector<1x8x128xf32> to vector<8x128xf32>
    %92 = tpu.concatenate %84, %91 in 0 : vector<8x128xf32>, vector<8x128xf32> -> vector<16x128xf32>
    %c0_51 = arith.constant 0 : index
    %c0_52 = arith.constant 0 : index
    %93 = vector.load %arg10[%c0_51, %c0_52] : memref<128x128xf32, #tpu.memory_space<vmem>>, vector<128x128xf32>
    %cst_53 = arith.constant dense<0.000000e+00> : vector<16x128xf32>
    %94 = tpu.matmul %92, %93, %cst_53 {dimension_numbers = #tpu.dot_dimension_numbers<[1], [0], [0], [1], [0, 0, 1, 1], [], []>} : vector<16x128xf32>, vector<128x128xf32>, vector<16x128xf32> -> vector<16x128xf32>
    %95 = arith.maximumf %92, %94 : vector<16x128xf32>
    %96 = vector.extract_strided_slice %95 {offsets = [0, 0], sizes = [8, 128], strides = [1, 1]} : vector<16x128xf32> to vector<8x128xf32>
    %97 = vector.extract_strided_slice %95 {offsets = [8, 0], sizes = [8, 128], strides = [1, 1]} : vector<16x128xf32> to vector<8x128xf32>
    %98 = arith.addf %96, %97 : vector<8x128xf32>
    %c0_54 = arith.constant 0 : index
    %c0_55 = arith.constant 0 : index
    %99 = vector.load %arg13[%c0_54, %c0_55] : memref<8x8xf32, #tpu.memory_space<vmem>>, vector<8x8xf32>
    %cst_56 = arith.constant dense<0.000000e+00> : vector<8x128xf32>
    %100 = tpu.matmul %99, %98, %cst_56 {dimension_numbers = #tpu.dot_dimension_numbers<[1], [0], [0], [1], [0, 0, 1, 1], [], []>} : vector<8x8xf32>, vector<8x128xf32>, vector<8x128xf32> -> vector<8x128xf32>
    %c0_57 = arith.constant 0 : index
    %c0_58 = arith.constant 0 : index
    %101 = vector.load %arg14[%c0_57, %c0_58] : memref<8x8xf32, #tpu.memory_space<vmem>>, vector<8x8xf32>
    %cst_59 = arith.constant dense<0.000000e+00> : vector<8x128xf32>
    %102 = tpu.matmul %101, %98, %cst_59 {dimension_numbers = #tpu.dot_dimension_numbers<[1], [0], [0], [1], [0, 0, 1, 1], [], []>} : vector<8x8xf32>, vector<8x128xf32>, vector<8x128xf32> -> vector<8x128xf32>
    %103 = tpu.concatenate %100, %98, %102 in 1 : vector<8x128xf32>, vector<8x128xf32>, vector<8x128xf32> -> vector<8x384xf32>
    %c0_60 = arith.constant 0 : index
    %c0_61 = arith.constant 0 : index
    %104 = vector.load %arg3[%c0_60, %c0_61] : memref<384x128xf32, #tpu.memory_space<vmem>>, vector<384x128xf32>
    %cst_62 = arith.constant dense<0.000000e+00> : vector<8x128xf32>
    %105 = tpu.matmul %103, %104, %cst_62 {dimension_numbers = #tpu.dot_dimension_numbers<[1], [0], [0], [1], [0, 0, 1, 1], [], []>} : vector<8x384xf32>, vector<384x128xf32>, vector<8x128xf32> -> vector<8x128xf32>
    %c0_63 = arith.constant 0 : index
    %c0_64 = arith.constant 0 : index
    %106 = vector.load %arg4[%c0_63, %c0_64] : memref<1x128xf32, #tpu.memory_space<vmem>>, vector<1x128xf32>
    %107 = vector.broadcast %106 : vector<1x128xf32> to vector<8x128xf32>
    %108 = arith.addf %105, %107 : vector<8x128xf32>
    %c0_65 = arith.constant 0 : index
    %c0_66 = arith.constant 0 : index
    %109 = vector.load %arg15[%c0_65, %c0_66] : memref<8x128xf32, #tpu.memory_space<vmem>>, vector<8x128xf32>
    tpu.vector_store %arg15[%c0_65, %c0_66], %108 {strides = array<i32>} : memref<8x128xf32, #tpu.memory_space<vmem>>, vector<8x128xf32>,
    return
  }
}

</mosaic_0001>

<bundles_post_ra>
// kernel: down_res_bloc.1
= control target key start
LH: loop header
LB: loop body
LE: loop exit
PB: predicated region body
PF: predicated region fallthrough
CT: control target
= control target key end

     0   :  { %v610_v0 = vlaneseq  ;;  %vm54_vm0 = vcmask 130048   ;;  %v2499_v3 = vmov 1983009808   ;;  %vm2501_vm1 = vmmov 0   ;;  %s3472_s0 = inlined_call_operand.vmem [shape: f32[1,16,128], index: 0, kind: input, shape index: {}]   ;;  %s3473_s11 = inlined_call_operand.vmem [shape: f32[16,16], index: 11, kind: input, shape index: {}]   ;;  %s3474_s1 = inlined_call_operand.vmem [shape: f32[384,128], index: 1, kind: input, shape index: {}]   ;;  %s3475_s12 = inlined_call_operand.vmem [shape: f32[16,16], index: 12, kind: input, shape index: {}]   ;;  %s3476_s9 = inlined_call_operand.vmem [shape: f32[128,128], index: 9, kind: input, shape index: {}]   ;;  %s3477_s2 = inlined_call_operand.vmem [shape: f32[384,128], index: 2, kind: input, shape index: {}]   ;;  %s3478_s5 = inlined_call_operand.vmem [shape: f32[1,128], index: 5, kind: input, shape index: {}]   ;;  %s3479_s6 = inlined_call_operand.vmem [shape: f32[1,128], index: 6, kind: input, shape index: {}]   ;;  %s3480_s10 = inlined_call_operand.vmem [shape: f32[128,128], index: 10, kind: input, shape index: {}]   ;;  %s3481_s7 = inlined_call_operand.vmem [shape: f32[1,128], index: 7, kind: input, shape index: {}]   ;;  %s3482_s8 = inlined_call_operand.vmem [shape: f32[1,128], index: 8, kind: input, shape index: {}]   ;;  %s3483_s3 = inlined_call_operand.vmem [shape: f32[384,128], index: 3, kind: input, shape index: {}]   ;;  %s3484_s13 = inlined_call_operand.vmem [shape: f32[8,8], index: 13, kind: input, shape index: {}]   ;;  %s3485_s14 = inlined_call_operand.vmem [shape: f32[8,8], index: 14, kind: input, shape index: {}]   ;;  %s3486_s4 = inlined_call_operand.vmem [shape: f32[1,128], index: 4, kind: input, shape index: {}]   ;;  %s3487_s15 = inlined_call_operand.vmem [shape: f32[8,128], index: 15, kind: output, shape index: {}]  }
   0x1   :  { %v2585_v1 = vld [vmem:[%s3472_s0 + $0x8] sm:$0xff]  ;;  %v50_v2 = vld [vmem:[%s3472_s0] sm:$0xff]  ;;  %v1167_v4 = vunpack.c.l.s4 %v2499_v3  ;;  %v250_v9 = vld [vmem:[%s3474_s1 + $0xf8] sm:$0xff]  ;;  %vm1355_vm6 = vcmask 1041409   ;;  %vm1357_vm7 = vcmask 1042434   ;;  %vm1359_vm8 = vcmask 1043459  }
   0x2   :  { %v2593_v5 = vld [vmem:[%s3473_s11] sm:$0xff]  ;;  %2162 = vmatprep.subr.mxu1 %v2585_v1  ;;  %v2599_v6 = vshrl.u32 %v610_v0, 7  ;;  %v2604_v8 = vld [vmem:[%s3473_s11 + $0x8] sm:$0xff]  ;;  %v234_v10 = vld [vmem:[%s3474_s1 + $0x78] sm:$0xff]  ;;  %331 = vmatprep.mubr.f32.mxu0 %v50_v2  ;;  %vm1361_vm9 = vcmask 1044484   ;;  %vm1363_vm10 = vcmask 1045509  }
   0x3   :  { %2166 = vmatprep.mubr.msk.f32.mxu1 %vm54_vm0, %v2593_v5  ;;  %2163 = vmatpush3.msra.mxu1 %v2585_v1  ;;  %v1168_v7 = vunpack.c.0.s8 %v1167_v4  ;;  %v2615_v11 = vld [vmem:[%s3475_s12] sm:$0xff]  ;;  %v249_v13 = vld [vmem:[%s3474_s1 + $0xf0] sm:$0xff]  ;;  %v2636_v16 = vld [vmem:[%s3475_s12 + $0x8] sm:$0xff]  ;;  %vm1365_vm11 = vcmask 1046534   ;;  %vm1367_vm12 = vcmask 1047559   ;;  %vm1513_vm13 = vcmask 64512  }
   0x4   :  { %2164 = vmatprep.subr.mxu1 %v50_v2  ;;  %1900 = vmatprep.subr.mxu0 %v250_v9  ;;  %v233_v14 = vld [vmem:[%s3474_s1 + $0x70] sm:$0xff]  ;;  %v248_v17 = vld [vmem:[%s3474_s1 + $0xe8] sm:$0xff]  ;;  %v266_v19 = vld [vmem:[%s3474_s1 + $0x178] sm:$0xff] }
   0x5   :  { %v2618_v12 = vsub.s32 %v1168_v7, %v2599_v6  ;;  %2165 = vmatpush3.msra.mxu1 %v50_v2  ;;  %1901 = vmatpush3.msra.mxu0 %v234_v10  ;;  %v232_v18 = vld [vmem:[%s3474_s1 + $0x68] sm:$0xff]  ;;  %v247_v20 = vld [vmem:[%s3474_s1 + $0xe0] sm:$0xff]  ;;  %v265_v22 = vld [vmem:[%s3474_s1 + $0x170] sm:$0xff] }
   0x6   :  { %2167 = vmatmul.mubr.msk.f32.vlgmr.msra.gmra.mxu1 %vm54_vm0, %v2604_v8  ;;  %2169 = vmatprep.subr.mxu1 %v2585_v1  ;;  %v231_v21 = vld [vmem:[%s3474_s1 + $0x60] sm:$0xff]  ;;  %v246_v23 = vld [vmem:[%s3474_s1 + $0xd8] sm:$0xff]  ;;  %v264_v25 = vld [vmem:[%s3474_s1 + $0x168] sm:$0xff] }
   0x7   :  { %v2630_v15 = vrot.slane %v50_v2, %v2618_v12  ;;  %2170 = vmatpush3.msra.mxu1 %v2585_v1  ;;  %2173 = vmatprep.mubr.msk.f32.mxu1 %vm54_vm0, %v2615_v11  ;;  %v230_v24 = vld [vmem:[%s3474_s1 + $0x58] sm:$0xff]  ;;  %v245_v26 = vld [vmem:[%s3474_s1 + $0xd0] sm:$0xff]  ;;  %v263_v28 = vld [vmem:[%s3474_s1 + $0x160] sm:$0xff] }
   0x8   :  { %2171 = vmatprep.subr.mxu1 %v50_v2  ;;  %1902 = vmatprep.subr.mxu0 %v249_v13  ;;  %v229_v27 = vld [vmem:[%s3474_s1 + $0x50] sm:$0xff]  ;;  %v244_v29 = vld [vmem:[%s3474_s1 + $0xc8] sm:$0xff]  ;;  %v262_v31 = vld [vmem:[%s3474_s1 + $0x158] sm:$0xff] }
   0x9   :  { %2172 = vmatpush3.msra.mxu1 %v50_v2  ;;  %1903 = vmatpush3.msra.mxu0 %v233_v14  ;;  %v228_v30 = vld [vmem:[%s3474_s1 + $0x48] sm:$0xff]  ;;  %v243_v32 = vld [vmem:[%s3474_s1 + $0xc0] sm:$0xff]  ;;  %v261_v34 = vld [vmem:[%s3474_s1 + $0x150] sm:$0xff]  ;;  %v2500_v2 = vmov 0.0  }
   0xa   :  { %2174 = vmatmul.mubr.msk.f32.vlgmr.msra.gmra.mxu1 %vm54_vm0, %v2636_v16  ;;  %1904 = vmatprep.subr.mxu0 %v248_v17  ;;  %v227_v33 = vld [vmem:[%s3474_s1 + $0x40] sm:$0xff]  ;;  %v242_v35 = vld [vmem:[%s3474_s1 + $0xb8] sm:$0xff]  ;;  %v260_v37 = vld [vmem:[%s3474_s1 + $0x148] sm:$0xff] }
   0xb   :  { %1905 = vmatpush3.msra.mxu0 %v232_v18  ;;  %2176 = vmatprep.subr.mxu1 %v266_v19  ;;  %v226_v36 = vld [vmem:[%s3474_s1 + $0x38] sm:$0xff]  ;;  %v241_v38 = vld [vmem:[%s3474_s1 + $0xb0] sm:$0xff]  ;;  %v259_v40 = vld [vmem:[%s3474_s1 + $0x140] sm:$0xff] }
   0xc   :  { %1906 = vmatprep.subr.mxu0 %v247_v20  ;;  %2177 = vmatpush3.msra.mxu1 %v266_v19  ;;  %v225_v39 = vld [vmem:[%s3474_s1 + $0x30] sm:$0xff]  ;;  %v240_v41 = vld [vmem:[%s3474_s1 + $0xa8] sm:$0xff]  ;;  %v258_v43 = vld [vmem:[%s3474_s1 + $0x138] sm:$0xff] }
   0xd   :  { %1907 = vmatpush3.msra.mxu0 %v231_v21  ;;  %2178 = vmatprep.subr.mxu1 %v265_v22  ;;  %v224_v42 = vld [vmem:[%s3474_s1 + $0x28] sm:$0xff]  ;;  %v239_v44 = vld [vmem:[%s3474_s1 + $0xa0] sm:$0xff]  ;;  %v257_v46 = vld [vmem:[%s3474_s1 + $0x130] sm:$0xff] }
   0xe   :  { %1908 = vmatprep.subr.mxu0 %v246_v23  ;;  %2179 = vmatpush3.msra.mxu1 %v265_v22  ;;  %v223_v45 = vld [vmem:[%s3474_s1 + $0x20] sm:$0xff]  ;;  %v238_v47 = vld [vmem:[%s3474_s1 + $0x98] sm:$0xff]  ;;  %v256_v49 = vld [vmem:[%s3474_s1 + $0x128] sm:$0xff] }
   0xf   :  { %1909 = vmatpush3.msra.mxu0 %v230_v24  ;;  %2180 = vmatprep.subr.mxu1 %v264_v25  ;;  %v222_v48 = vld [vmem:[%s3474_s1 + $0x18] sm:$0xff]  ;;  %v237_v50 = vld [vmem:[%s3474_s1 + $0x90] sm:$0xff]  ;;  %v255_v52 = vld [vmem:[%s3474_s1 + $0x120] sm:$0xff] }
  0x10   :  { %1910 = vmatprep.subr.mxu0 %v245_v26  ;;  %2181 = vmatpush3.msra.mxu1 %v264_v25  ;;  %v221_v51 = vld [vmem:[%s3474_s1 + $0x10] sm:$0xff]  ;;  %v236_v53 = vld [vmem:[%s3474_s1 + $0x88] sm:$0xff]  ;;  %v254_v55 = vld [vmem:[%s3474_s1 + $0x118] sm:$0xff] }
  0x11   :  { %1911 = vmatpush3.msra.mxu0 %v229_v27  ;;  %2182 = vmatprep.subr.mxu1 %v263_v28  ;;  %v220_v54 = vld [vmem:[%s3474_s1 + $0x8] sm:$0xff]  ;;  %v235_v56 = vld [vmem:[%s3474_s1 + $0x80] sm:$0xff]  ;;  %v253_v58 = vld [vmem:[%s3474_s1 + $0x110] sm:$0xff] }
  0x12   :  { %1912 = vmatprep.subr.mxu0 %v244_v29  ;;  %2183 = vmatpush3.msra.mxu1 %v263_v28  ;;  %v219_v57 = vld [vmem:[%s3474_s1] sm:$0xff]  ;;  %v252_v59 = vld [vmem:[%s3474_s1 + $0x108] sm:$0xff]  ;;  %v2779_v3 = vld [vmem:[%s3476_s9 + $0x78] sm:$0xff] }
  0x13   :  { %1913 = vmatpush3.msra.mxu0 %v228_v30  ;;  %2184 = vmatprep.subr.mxu1 %v262_v31  ;;  %v251_v60 = vld [vmem:[%s3474_s1 + $0x100] sm:$0xff]  ;;  %v2797_v4 = vld [vmem:[%s3476_s9 + $0x68] sm:$0xff]  ;;  %v2815_v9 = vld [vmem:[%s3476_s9 + $0x58] sm:$0xff] }
  0x14   :  { %1914 = vmatprep.subr.mxu0 %v243_v32  ;;  %2185 = vmatpush3.msra.mxu1 %v262_v31  ;;  %v2806_v7 = vld [vmem:[%s3476_s9 + $0x60] sm:$0xff]  ;;  %v2824_v10 = vld [vmem:[%s3476_s9 + $0x50] sm:$0xff]  ;;  %v2833_v13 = vld [vmem:[%s3476_s9 + $0x48] sm:$0xff] }
  0x15   :  { %1915 = vmatpush3.msra.mxu0 %v227_v33  ;;  %2186 = vmatprep.subr.mxu1 %v261_v34  ;;  %v2842_v14 = vld [vmem:[%s3476_s9 + $0x40] sm:$0xff]  ;;  %v2851_v17 = vld [vmem:[%s3476_s9 + $0x38] sm:$0xff]  ;;  %v2860_v18 = vld [vmem:[%s3476_s9 + $0x30] sm:$0xff] }
  0x16   :  { %1916 = vmatprep.subr.mxu0 %v242_v35  ;;  %2187 = vmatpush3.msra.mxu1 %v261_v34  ;;  %v2869_v19 = vld [vmem:[%s3476_s9 + $0x28] sm:$0xff]  ;;  %v2878_v20 = vld [vmem:[%s3476_s9 + $0x20] sm:$0xff]  ;;  %v2887_v21 = vld [vmem:[%s3476_s9 + $0x18] sm:$0xff] }
  0x17   :  { %1917 = vmatpush3.msra.mxu0 %v226_v36  ;;  %2188 = vmatprep.subr.mxu1 %v260_v37  ;;  %v2896_v22 = vld [vmem:[%s3476_s9 + $0x10] sm:$0xff]  ;;  %v2905_v23 = vld [vmem:[%s3476_s9 + $0x8] sm:$0xff]  ;;  %v2911_v24 = vld [vmem:[%s3476_s9] sm:$0xff] }
  0x18   :  { %1918 = vmatprep.subr.mxu0 %v241_v38  ;;  %2189 = vmatpush3.msra.mxu1 %v260_v37 }
  0x19   :  { %1919 = vmatpush3.msra.mxu0 %v225_v39  ;;  %2190 = vmatprep.subr.mxu1 %v259_v40 }
  0x1a   :  { %1920 = vmatprep.subr.mxu0 %v240_v41  ;;  %2191 = vmatpush3.msra.mxu1 %v259_v40 }
  0x1b   :  { %1921 = vmatpush3.msra.mxu0 %v224_v42  ;;  %2192 = vmatprep.subr.mxu1 %v258_v43 }
  0x1c   :  { %1922 = vmatprep.subr.mxu0 %v239_v44  ;;  %2193 = vmatpush3.msra.mxu1 %v258_v43 }
  0x1d   :  { %1923 = vmatpush3.msra.mxu0 %v223_v45  ;;  %2194 = vmatprep.subr.mxu1 %v257_v46 }
  0x1e   :  { %1924 = vmatprep.subr.mxu0 %v238_v47  ;;  %2195 = vmatpush3.msra.mxu1 %v257_v46 }
  0x1f   :  { %1925 = vmatpush3.msra.mxu0 %v222_v48  ;;  %2196 = vmatprep.subr.mxu1 %v256_v49 }
  0x20   :  { %1926 = vmatprep.subr.mxu0 %v237_v50  ;;  %2197 = vmatpush3.msra.mxu1 %v256_v49 }
  0x21   :  { %1927 = vmatpush3.msra.mxu0 %v221_v51  ;;  %2198 = vmatprep.subr.mxu1 %v255_v52 }
  0x22   :  { %1928 = vmatprep.subr.mxu0 %v236_v53  ;;  %2199 = vmatpush3.msra.mxu1 %v255_v52 }
  0x23   :  { %1929 = vmatpush3.msra.mxu0 %v220_v54  ;;  %2200 = vmatprep.subr.mxu1 %v254_v55 }
  0x24   :  { %1930 = vmatprep.subr.mxu0 %v235_v56  ;;  %2201 = vmatpush3.msra.mxu1 %v254_v55 }
  0x25   :  { %1931 = vmatpush3.msra.mxu0 %v219_v57  ;;  %2202 = vmatprep.subr.mxu1 %v253_v58 }
  0x26   :  { %2203 = vmatpush3.msra.mxu1 %v253_v58  ;;  %2211 = vmatprep.subr.mxu0 %v2500_v2 }
  0x27   :  { %2204 = vmatprep.subr.mxu1 %v252_v59 }
  0x28   :  { %2205 = vmatpush3.msra.mxu1 %v252_v59 }
  0x29   :  { %2206 = vmatprep.subr.mxu1 %v251_v60 }
  0x2a   :  { %2207 = vmatpush3.msra.mxu1 %v251_v60 }
  0x2b   :  { %2246 = vmatprep.subr.mxu1 %v2500_v2 }
  0xc6   :  { %v2168_v61 = vpop.f32.mrf.mxu1 }
  0xc8   :  { %v127_v62 = vpop.f32.mrf.mxu1 }
  0xc9   :  { %332 = vmatmul.mubr.f32.vlgmr.msra.gmra.mxu0 %v127_v62  ;;  %v789_v62 = vld [vmem:[%s3477_s2 + $0x78] sm:$0xff] }
  0xca   :  { %v2175_v63 = vpop.f32.mrf.mxu1  ;;  %336 = vmatprep.mubr.f32.mxu0 %v2585_v1  ;;  %2212 = vmatpush3.msra.mxu0 %v2779_v3  ;;  %v2788_v1 = vld [vmem:[%s3476_s9 + $0x70] sm:$0xff] }
  0xcb   :  { %2213 = vmatprep.subr.mxu0 %v2500_v2 }
  0xcc   :  { %v210_v0 = vpop.f32.mrf.mxu1  ;;  %2214 = vmatpush3.msra.mxu0 %v2788_v1 }
  0xcd   :  { %337 = vmatmul.mubr.f32.gmra.mxu0 %v2168_v61  ;;  %2208 = vmatprep.mubr.f32.mxu1 %v210_v0  ;;  %v805_v61 = vld [vmem:[%s3477_s2 + $0xf8] sm:$0xff]  ;;  %v788_v0 = vld [vmem:[%s3477_s2 + $0x70] sm:$0xff] }
  0xce   :  { %2209 = vmatmul.mubr.f32.vlgmr.msra.gmra.mxu1 %v2175_v63  ;;  %2215 = vmatprep.subr.mxu0 %v2500_v2  ;;  %v804_v63 = vld [vmem:[%s3477_s2 + $0xf0] sm:$0xff] }
  0xcf   :  { %2247 = vmatpush3.msra.mxu1 %v2779_v3  ;;  %2216 = vmatpush3.msra.mxu0 %v2797_v4 }
  0xd0   :  { %2248 = vmatprep.subr.mxu1 %v2500_v2  ;;  %2217 = vmatprep.subr.mxu0 %v2500_v2 }
  0xd1   :  { %2249 = vmatpush3.msra.mxu1 %v2788_v1  ;;  %2218 = vmatpush3.msra.mxu0 %v2806_v7 }
  0xd2   :  { %2250 = vmatprep.subr.mxu1 %v2500_v2  ;;  %2219 = vmatprep.subr.mxu0 %v2500_v2 }
  0xd3   :  { %2251 = vmatpush3.msra.mxu1 %v2797_v4  ;;  %2220 = vmatpush3.msra.mxu0 %v2815_v9 }
  0xd4   :  { %2252 = vmatprep.subr.mxu1 %v2500_v2  ;;  %2221 = vmatprep.subr.mxu0 %v2500_v2 }
  0xd5   :  { %2253 = vmatpush3.msra.mxu1 %v2806_v7  ;;  %2222 = vmatpush3.msra.mxu0 %v2824_v10 }
  0xd6   :  { %2254 = vmatprep.subr.mxu1 %v2500_v2  ;;  %2223 = vmatprep.subr.mxu0 %v2500_v2 }
  0xd7   :  { %2255 = vmatpush3.msra.mxu1 %v2815_v9  ;;  %2224 = vmatpush3.msra.mxu0 %v2833_v13 }
  0xd8   :  { %2256 = vmatprep.subr.mxu1 %v2500_v2  ;;  %2225 = vmatprep.subr.mxu0 %v2500_v2 }
  0xd9   :  { %2257 = vmatpush3.msra.mxu1 %v2824_v10  ;;  %2226 = vmatpush3.msra.mxu0 %v2842_v14 }
  0xda   :  { %2258 = vmatprep.subr.mxu1 %v2500_v2  ;;  %2227 = vmatprep.subr.mxu0 %v2500_v2 }
  0xdb   :  { %2259 = vmatpush3.msra.mxu1 %v2833_v13  ;;  %2228 = vmatpush3.msra.mxu0 %v2851_v17 }
  0xdc   :  { %2260 = vmatprep.subr.mxu1 %v2500_v2  ;;  %2229 = vmatprep.subr.mxu0 %v2500_v2 }
  0xdd   :  { %2261 = vmatpush3.msra.mxu1 %v2842_v14  ;;  %2230 = vmatpush3.msra.mxu0 %v2860_v18 }
  0xde   :  { %2262 = vmatprep.subr.mxu1 %v2500_v2  ;;  %2231 = vmatprep.subr.mxu0 %v2500_v2 }
  0xdf   :  { %2263 = vmatpush3.msra.mxu1 %v2851_v17  ;;  %2232 = vmatpush3.msra.mxu0 %v2869_v19 }
  0xe0   :  { %2264 = vmatprep.subr.mxu1 %v2500_v2  ;;  %2233 = vmatprep.subr.mxu0 %v2500_v2 }
  0xe1   :  { %2265 = vmatpush3.msra.mxu1 %v2860_v18  ;;  %2234 = vmatpush3.msra.mxu0 %v2878_v20 }
  0xe2   :  { %2266 = vmatprep.subr.mxu1 %v2500_v2  ;;  %2235 = vmatprep.subr.mxu0 %v2500_v2 }
  0xe3   :  { %2267 = vmatpush3.msra.mxu1 %v2869_v19  ;;  %2236 = vmatpush3.msra.mxu0 %v2887_v21 }
  0xe4   :  { %2268 = vmatprep.subr.mxu1 %v2500_v2  ;;  %2237 = vmatprep.subr.mxu0 %v2500_v2 }
  0xe5   :  { %2269 = vmatpush3.msra.mxu1 %v2878_v20  ;;  %2238 = vmatpush3.msra.mxu0 %v2896_v22 }
  0xe6   :  { %2270 = vmatprep.subr.mxu1 %v2500_v2  ;;  %2239 = vmatprep.subr.mxu0 %v2500_v2 }
  0xe7   :  { %2271 = vmatpush3.msra.mxu1 %v2887_v21  ;;  %2240 = vmatpush3.msra.mxu0 %v2905_v23 }
  0xe8   :  { %2272 = vmatprep.subr.mxu1 %v2500_v2  ;;  %2243 = vmatprep.mubr.msk.f32.mxu0 %vm2501_vm1, %v2500_v2 }
  0xe9   :  { %2273 = vmatpush3.msra.mxu1 %v2896_v22  ;;  %2241 = vmatprep.subr.mxu0 %v2500_v2 }
  0xea   :  { %2274 = vmatprep.subr.mxu1 %v2500_v2  ;;  %2242 = vmatpush3.msra.mxu0 %v2911_v24 }
  0xeb   :  { %2275 = vmatpush3.msra.mxu1 %v2905_v23  ;;  %2278 = vmatprep.mubr.msk.f32.mxu1 %vm2501_vm1, %v2500_v2 }
  0xec   :  { %2276 = vmatprep.subr.mxu1 %v2500_v2  ;;  %1998 = vmatprep.subr.mxu0 %v805_v61 }
  0xed   :  { %2277 = vmatpush3.msra.mxu1 %v2911_v24 }
 0x189   :  { %v1932_v25 = vpop.f32.mrf.mxu0 }
 0x18b   :  { %v1933_v26 = vpop.f32.mrf.mxu0 }
 0x18c   :  { %v1934_v29 = vadd.f32 %v1933_v26, %v1932_v25  ;;  %v787_v25 = vld [vmem:[%s3477_s2 + $0x68] sm:$0xff]  ;;  %v802_v26 = vld [vmem:[%s3477_s2 + $0xe0] sm:$0xff] }
 0x18d   :  { %v1935_v27 = vpop.f32.mrf.mxu0 }
 0x18e   :  { %v2210_v28 = vpop.f32.mrf.mxu1 }
 0x18f   :  { %v1936_v30 = vpop.f32.mrf.mxu0 }
 0x190   :  { %v1937_v31 = vadd.f32 %v1936_v30, %v1935_v27  ;;  %v408_v32 = vpop.f32.mrf.mxu1  ;;  %v786_v27 = vld [vmem:[%s3477_s2 + $0x60] sm:$0xff]  ;;  %v800_v30 = vld [vmem:[%s3477_s2 + $0xd0] sm:$0xff] }
 0x191   :  { %v409_v33 = vadd.f32 %v1934_v29, %v408_v32  ;;  %v785_v29 = vld [vmem:[%s3477_s2 + $0x58] sm:$0xff]  ;;  %v799_v32 = vld [vmem:[%s3477_s2 + $0xc8] sm:$0xff] }
 0x192   :  { %v414_v34 = vadd.f32 %v2210_v28, %v1937_v31  ;;  %v801_v28 = vld [vmem:[%s3477_s2 + $0xd8] sm:$0xff]  ;;  %v784_v31 = vld [vmem:[%s3477_s2 + $0x50] sm:$0xff] }
 0x193   :  { %v419_v35 = vmin.f32 %v409_v33, 0.0  ;;  %vm417_vm2 = vcmp.gt.f32.partialorder %v409_v33, 0.0 }
 0x194   :  { %v420_v36 = vmin.f32 %v414_v34, 0.0  ;;  %vm418_vm3 = vcmp.gt.f32.partialorder %v414_v34, 0.0 }
 0x195   :  { %v421_v37 = vmul.f32 1.442695, %v419_v35  ;;  %v782_v35 = vld [vmem:[%s3477_s2 + $0x40] sm:$0xff] }
 0x196   :  { %v423_v38 = vmul.f32 1.442695, %v420_v36  ;;  %v797_v36 = vld [vmem:[%s3477_s2 + $0xb8] sm:$0xff] }
 0x197   :  { %2485 = vpow2.f32 %v421_v37  ;;  %v781_v37 = vld [vmem:[%s3477_s2 + $0x38] sm:$0xff] }
 0x198   :  { %2487 = vpow2.f32 %v423_v38  ;;  %v796_v38 = vld [vmem:[%s3477_s2 + $0xb0] sm:$0xff] }
 0x1a4   :  { %v2486_v39 = vpop.eup %2485 }
 0x1a5   :  { %v2488_v40 = vpop.eup %2487  ;;  %v1865_v41 = vadd.f32 -1.0, %v2486_v39  ;;  %v780_v39 = vld [vmem:[%s3477_s2 + $0x30] sm:$0xff] }
 0x1a6   :  { %v1866_v42 = vadd.f32 -1.0, %v2488_v40  ;;  %v795_v40 = vld [vmem:[%s3477_s2 + $0xa8] sm:$0xff] }
 0x1a7   :  { %v2923_v43 = vsel %vm417_vm2, %v409_v33, %v1865_v41  ;;  %v783_v33 = vld [vmem:[%s3477_s2 + $0x48] sm:$0xff] }
 0x1a8   :  { %v2925_v44 = vsel %vm418_vm3, %v414_v34, %v1866_v42  ;;  %v436_v45 = vmul.f32 %v2923_v43, %v2923_v43  ;;  %v798_v34 = vld [vmem:[%s3477_s2 + $0xc0] sm:$0xff]  ;;  %v779_v41 = vld [vmem:[%s3477_s2 + $0x28] sm:$0xff] }
 0x1a9   :  { %v437_v46 = vmul.f32 %v2925_v44, %v2925_v44  ;;  %v429_v47 = vadd.f32 %v2925_v44, %v2923_v43  ;;  %v794_v42 = vld [vmem:[%s3477_s2 + $0xa0] sm:$0xff] }
 0x1ab   :  { %v430_v48 = vrot.slane %v429_v47, 4  ;;  %v438_v49 = vadd.f32 %v437_v46, %v436_v45  ;;  %v778_v45 = vld [vmem:[%s3477_s2 + $0x20] sm:$0xff]  ;;  %v793_v46 = vld [vmem:[%s3477_s2 + $0x98] sm:$0xff] }
 0x1ad   :  { %v431_v50 = vadd.f32 %v430_v48, %v429_v47  ;;  %v439_v51 = vrot.slane %v438_v49, 4  ;;  %v777_v47 = vld [vmem:[%s3477_s2 + $0x18] sm:$0xff]  ;;  %v792_v48 = vld [vmem:[%s3477_s2 + $0x90] sm:$0xff] }
 0x1af   :  { %v432_v52 = vrot.slane %v431_v50, 2  ;;  %v440_v53 = vadd.f32 %v439_v51, %v438_v49  ;;  %v776_v49 = vld [vmem:[%s3477_s2 + $0x10] sm:$0xff] }
 0x1b1   :  { %v433_v54 = vadd.f32 %v432_v52, %v431_v50  ;;  %v441_v55 = vrot.slane %v440_v53, 2  ;;  %v791_v50 = vld [vmem:[%s3477_s2 + $0x88] sm:$0xff] }
 0x1b3   :  { %v434_v56 = vrot.slane %v433_v54, 1  ;;  %v442_v57 = vadd.f32 %v441_v55, %v440_v53 }
 0x1b5   :  { %v435_v58 = vadd.f32 %v434_v56, %v433_v54  ;;  %v443_v59 = vrot.slane %v442_v57, 1 }
 0x1b7   :  { %2244 = vmatmul.mubr.f32.vlgmr.msra.gmra.mxu0 %v435_v58  ;;  %v444_v60 = vadd.f32 %v443_v59, %v442_v57  ;;  %v605_v58 = vld [vmem:[%s3478_s5] sm:$0x1]  ;;  %v3026_v59 = vsub.s32 0, %v2599_v6 }
 0x1b8   :  { %1999 = vmatpush3.msra.mxu0 %v789_v62  ;;  %v607_v62 = vld [vmem:[%s3479_s6] sm:$0x1] }
 0x1b9   :  { %2279 = vmatmul.mubr.f32.vlgmr.msra.gmra.mxu1 %v444_v60  ;;  %2000 = vmatprep.subr.mxu0 %v804_v63 }
 0x1ba   :  { %2285 = vmatprep.mubr.msk.f32.mxu1 %vm54_vm0, %v2593_v5  ;;  %v803_v5 = vld [vmem:[%s3477_s2 + $0xe8] sm:$0xff]  ;;  %2001 = vmatpush3.msra.mxu0 %v788_v0 }
 0x1bb   :  { %2002 = vmatprep.subr.mxu0 %v803_v5 }
 0x1bc   :  { %2003 = vmatpush3.msra.mxu0 %v787_v25 }
 0x1bd   :  { %2004 = vmatprep.subr.mxu0 %v802_v26 }
 0x1be   :  { %2005 = vmatpush3.msra.mxu0 %v786_v27 }
 0x1bf   :  { %2006 = vmatprep.subr.mxu0 %v801_v28 }
 0x1c0   :  { %2007 = vmatpush3.msra.mxu0 %v785_v29  ;;  %v817_v29 = vld [vmem:[%s3477_s2 + $0x158] sm:$0xff] }
 0x1c1   :  { %2008 = vmatprep.subr.mxu0 %v800_v30  ;;  %v815_v30 = vld [vmem:[%s3477_s2 + $0x148] sm:$0xff] }
 0x1c2   :  { %2009 = vmatpush3.msra.mxu0 %v784_v31  ;;  %v814_v31 = vld [vmem:[%s3477_s2 + $0x140] sm:$0xff] }
 0x1c3   :  { %2010 = vmatprep.subr.mxu0 %v799_v32  ;;  %v813_v32 = vld [vmem:[%s3477_s2 + $0x138] sm:$0xff] }
 0x1c4   :  { %2011 = vmatpush3.msra.mxu0 %v783_v33  ;;  %v812_v33 = vld [vmem:[%s3477_s2 + $0x130] sm:$0xff] }
 0x1c5   :  { %2012 = vmatprep.subr.mxu0 %v798_v34  ;;  %v811_v34 = vld [vmem:[%s3477_s2 + $0x128] sm:$0xff] }
 0x1c6   :  { %2013 = vmatpush3.msra.mxu0 %v782_v35  ;;  %v810_v35 = vld [vmem:[%s3477_s2 + $0x120] sm:$0xff] }
 0x1c7   :  { %2014 = vmatprep.subr.mxu0 %v797_v36  ;;  %v775_v36 = vld [vmem:[%s3477_s2 + $0x8] sm:$0xff] }
 0x1c8   :  { %2015 = vmatpush3.msra.mxu0 %v781_v37  ;;  %v809_v37 = vld [vmem:[%s3477_s2 + $0x118] sm:$0xff] }
 0x1c9   :  { %2016 = vmatprep.subr.mxu0 %v796_v38  ;;  %v790_v38 = vld [vmem:[%s3477_s2 + $0x80] sm:$0xff] }
 0x1ca   :  { %2017 = vmatpush3.msra.mxu0 %v780_v39  ;;  %v774_v39 = vld [vmem:[%s3477_s2] sm:$0xff] }
 0x1cb   :  { %2018 = vmatprep.subr.mxu0 %v795_v40  ;;  %v808_v40 = vld [vmem:[%s3477_s2 + $0x110] sm:$0xff] }
 0x1cc   :  { %2019 = vmatpush3.msra.mxu0 %v779_v41  ;;  %v807_v41 = vld [vmem:[%s3477_s2 + $0x108] sm:$0xff] }
 0x1cd   :  { %2020 = vmatprep.subr.mxu0 %v794_v42  ;;  %v806_v42 = vld [vmem:[%s3477_s2 + $0x100] sm:$0xff] }
 0x1ce   :  { %2021 = vmatpush3.msra.mxu0 %v778_v45 }
 0x1cf   :  { %2022 = vmatprep.subr.mxu0 %v793_v46 }
 0x1d0   :  { %2023 = vmatpush3.msra.mxu0 %v777_v47 }
 0x1d1   :  { %2024 = vmatprep.subr.mxu0 %v792_v48 }
 0x1d2   :  { %2025 = vmatpush3.msra.mxu0 %v776_v49 }
 0x1d3   :  { %2026 = vmatprep.subr.mxu0 %v791_v50 }
 0x1d4   :  { %2027 = vmatpush3.msra.mxu0 %v775_v36 }
 0x1d5   :  { %2028 = vmatprep.subr.mxu0 %v790_v38  ;;  %v1422_v38 = vld [vmem:[%s3480_s10 + $0x20] sm:$0xff] }
 0x1d6   :  { %2029 = vmatpush3.msra.mxu0 %v774_v39 }
 0x1d7   :  { %2330 = vmatprep.subr.mxu0 %v2500_v2 }
 0x277   :  { %v527_v51 = vpop.f32.mrf.mxu0 }
 0x278   :  { %v601_v52 = vmul.f32 %v527_v51, %v527_v51 }
 0x279   :  { %v2245_v53 = vpop.f32.mrf.mxu0  ;;  %v597_v54 = vpop.f32.mrf.mxu1 }
 0x27a   :  { %v602_v55 = vsub.f32 %v597_v54, %v601_v52 }
 0x27b   :  { %v2280_v56 = vpop.f32.mrf.mxu1 }
 0x27c   :  { %v603_v57 = vadd.f32 1e-05, %v602_v55 }
 0x27e   :  { %2489 = vrsqrt.f32 %v603_v57 }
 0x28b   :  { %v2490_v60 = vpop.eup %2489 }
 0x28c   :  { %v606_v61 = vmul.f32 %v2490_v60, %v605_v58 }
 0x28e   :  { %v608_v63 = vmul.f32 %v606_v61, %v527_v51  ;;  %v613_v0 = vrot.slane %v606_v61, %v3026_v59 }
 0x290   :  { %v609_v5 = vsub.f32 %v607_v62, %v608_v63  ;;  %v615_v25 = vmul.f32 %v613_v0, %v2925_v44  ;;  %v614_v27 = vmul.f32 %v613_v0, %v2923_v43  ;;  %v821_v43 = vld [vmem:[%s3477_s2 + $0x178] sm:$0xff]  ;;  %v820_v44 = vld [vmem:[%s3477_s2 + $0x170] sm:$0xff] }
 0x292   :  { %v620_v26 = vrot.slane %v609_v5, %v3026_v59 }
 0x294   :  { %v3035_v28 = vadd.f32 %v620_v26, %v615_v25  ;;  %v622_v6 = vadd.f32 %v620_v26, %v614_v27 }
 0x296   :  { %2281 = vmatprep.subr.mxu1 %v3035_v28  ;;  %886 = vmatprep.mubr.f32.mxu0 %v622_v6 }
 0x297   :  { %2282 = vmatpush3.msra.mxu1 %v3035_v28 }
 0x298   :  { %2283 = vmatprep.subr.mxu1 %v622_v6 }
 0x299   :  { %2284 = vmatpush3.msra.mxu1 %v622_v6 }
 0x29a   :  { %2286 = vmatmul.mubr.msk.f32.vlgmr.msra.gmra.mxu1 %vm54_vm0, %v2604_v8  ;;  %2288 = vmatprep.subr.mxu1 %v3035_v28  ;;  %v819_v8 = vld [vmem:[%s3477_s2 + $0x168] sm:$0xff] }
 0x29b   :  { %2289 = vmatpush3.msra.mxu1 %v3035_v28  ;;  %2292 = vmatprep.mubr.msk.f32.mxu1 %vm54_vm0, %v2615_v11  ;;  %v818_v11 = vld [vmem:[%s3477_s2 + $0x160] sm:$0xff] }
 0x29c   :  { %2290 = vmatprep.subr.mxu1 %v622_v6 }
 0x29d   :  { %2291 = vmatpush3.msra.mxu1 %v622_v6  ;;  %v1433_v6 = vld [vmem:[%s3480_s10 + $0x78] sm:$0xff] }
 0x29e   :  { %2293 = vmatmul.mubr.msk.f32.vlgmr.msra.gmra.mxu1 %vm54_vm0, %v2636_v16  ;;  %2295 = vmatprep.subr.mxu1 %v821_v43  ;;  %v816_v16 = vld [vmem:[%s3477_s2 + $0x150] sm:$0xff] }
 0x29f   :  { %2296 = vmatpush3.msra.mxu1 %v821_v43  ;;  %v1432_v43 = vld [vmem:[%s3480_s10 + $0x70] sm:$0xff] }
 0x2a0   :  { %2297 = vmatprep.subr.mxu1 %v820_v44 }
 0x2a1   :  { %2298 = vmatpush3.msra.mxu1 %v820_v44  ;;  %v1431_v44 = vld [vmem:[%s3480_s10 + $0x68] sm:$0xff] }
 0x2a2   :  { %2299 = vmatprep.subr.mxu1 %v819_v8 }
 0x2a3   :  { %2300 = vmatpush3.msra.mxu1 %v819_v8  ;;  %v1430_v8 = vld [vmem:[%s3480_s10 + $0x60] sm:$0xff] }
 0x2a4   :  { %2301 = vmatprep.subr.mxu1 %v818_v11 }
 0x2a5   :  { %2302 = vmatpush3.msra.mxu1 %v818_v11  ;;  %v1429_v11 = vld [vmem:[%s3480_s10 + $0x58] sm:$0xff] }
 0x2a6   :  { %2303 = vmatprep.subr.mxu1 %v817_v29 }
 0x2a7   :  { %2304 = vmatpush3.msra.mxu1 %v817_v29  ;;  %v1428_v29 = vld [vmem:[%s3480_s10 + $0x50] sm:$0xff] }
 0x2a8   :  { %2305 = vmatprep.subr.mxu1 %v816_v16 }
 0x2a9   :  { %2306 = vmatpush3.msra.mxu1 %v816_v16  ;;  %v1427_v16 = vld [vmem:[%s3480_s10 + $0x48] sm:$0xff] }
 0x2aa   :  { %2307 = vmatprep.subr.mxu1 %v815_v30 }
 0x2ab   :  { %2308 = vmatpush3.msra.mxu1 %v815_v30  ;;  %v1426_v30 = vld [vmem:[%s3480_s10 + $0x40] sm:$0xff] }
 0x2ac   :  { %2309 = vmatprep.subr.mxu1 %v814_v31 }
 0x2ad   :  { %2310 = vmatpush3.msra.mxu1 %v814_v31  ;;  %v1425_v31 = vld [vmem:[%s3480_s10 + $0x38] sm:$0xff] }
 0x2ae   :  { %2311 = vmatprep.subr.mxu1 %v813_v32 }
 0x2af   :  { %2312 = vmatpush3.msra.mxu1 %v813_v32  ;;  %v2497_v32 = vld [vmem:[%s3472_s0] sm:$0xff] }
 0x2b0   :  { %2313 = vmatprep.subr.mxu1 %v812_v33 }
 0x2b1   :  { %2314 = vmatpush3.msra.mxu1 %v812_v33  ;;  %v1241_v33 = vcombine.high %v2497_v32, %v2497_v32  ;;  %v1146_v32 = vld [vmem:[%s3482_s8] sm:$0x1] }
 0x2b2   :  { %2315 = vmatprep.subr.mxu1 %v811_v34 }
 0x2b3   :  { %2316 = vmatpush3.msra.mxu1 %v811_v34  ;;  %v1424_v34 = vld [vmem:[%s3480_s10 + $0x30] sm:$0xff]  ;;  %v1255_v36 = vrot.slane %v1241_v33, %v2618_v12 }
 0x2b4   :  { %2317 = vmatprep.subr.mxu1 %v810_v35 }
 0x2b5   :  { %2318 = vmatpush3.msra.mxu1 %v810_v35  ;;  %v1423_v35 = vld [vmem:[%s3480_s10 + $0x28] sm:$0xff]  ;;  %v1257_v39 = vcombine.high %v1255_v36, %v1255_v36 }
 0x2b6   :  { %2319 = vmatprep.subr.mxu1 %v809_v37 }
 0x2b7   :  { %2320 = vmatpush3.msra.mxu1 %v809_v37  ;;  %v1256_v37 = vcombine.high %v2630_v15, %v2630_v15 }
 0x2b8   :  { %2321 = vmatprep.subr.mxu1 %v808_v40 }
 0x2b9   :  { %2322 = vmatpush3.msra.mxu1 %v808_v40  ;;  %v2498_v40 = vld [vmem:[%s3472_s0 + $0x8] sm:$0xff] }
 0x2ba   :  { %2323 = vmatprep.subr.mxu1 %v807_v41 }
 0x2bb   :  { %2324 = vmatpush3.msra.mxu1 %v807_v41  ;;  %v1258_v41 = vcombine.high %v2498_v40, %v2498_v40 }
 0x2bc   :  { %2325 = vmatprep.subr.mxu1 %v806_v42 }
 0x2bd   :  { %2326 = vmatpush3.msra.mxu1 %v806_v42  ;;  %v1265_v42 = vrot.slane %v2498_v40, %v2618_v12 }
 0x2be   :  { %2365 = vmatprep.subr.mxu1 %v2500_v2 }
 0x35a   :  { %v2287_v45 = vpop.f32.mrf.mxu1 }
 0x35c   :  { %v690_v46 = vpop.f32.mrf.mxu1 }
 0x35d   :  { %887 = vmatmul.mubr.f32.vlgmr.msra.gmra.mxu0 %v690_v46  ;;  %v1421_v46 = vld [vmem:[%s3480_s10 + $0x18] sm:$0xff] }
 0x35e   :  { %v2294_v47 = vpop.f32.mrf.mxu1  ;;  %891 = vmatprep.mubr.f32.mxu0 %v3035_v28  ;;  %2331 = vmatpush3.msra.mxu0 %v2779_v3 }
 0x35f   :  { %2332 = vmatprep.subr.mxu0 %v2500_v2 }
 0x360   :  { %v765_v48 = vpop.f32.mrf.mxu1  ;;  %2333 = vmatpush3.msra.mxu0 %v2788_v1 }
 0x361   :  { %892 = vmatmul.mubr.f32.gmra.mxu0 %v2287_v45  ;;  %2327 = vmatprep.mubr.f32.mxu1 %v765_v48  ;;  %v1881_v45 = vrot.slane %v2630_v15, 9  ;;  %v1883_v48 = vrot.slane %v1255_v36, 9 }
 0x362   :  { %2328 = vmatmul.mubr.f32.vlgmr.msra.gmra.mxu1 %v2294_v47  ;;  %2334 = vmatprep.subr.mxu0 %v2500_v2  ;;  %v1882_v47 = vrot.slane %v1256_v37, 9 }
 0x363   :  { %2366 = vmatpush3.msra.mxu1 %v2779_v3  ;;  %2335 = vmatpush3.msra.mxu0 %v2797_v4 }
 0x364   :  { %2367 = vmatprep.subr.mxu1 %v2500_v2  ;;  %2336 = vmatprep.subr.mxu0 %v2500_v2 }
 0x365   :  { %2368 = vmatpush3.msra.mxu1 %v2788_v1  ;;  %2337 = vmatpush3.msra.mxu0 %v2806_v7 }
 0x366   :  { %2369 = vmatprep.subr.mxu1 %v2500_v2  ;;  %2338 = vmatprep.subr.mxu0 %v2500_v2 }
 0x367   :  { %2370 = vmatpush3.msra.mxu1 %v2797_v4  ;;  %2339 = vmatpush3.msra.mxu0 %v2815_v9 }
 0x368   :  { %2371 = vmatprep.subr.mxu1 %v2500_v2  ;;  %2340 = vmatprep.subr.mxu0 %v2500_v2 }
 0x369   :  { %2372 = vmatpush3.msra.mxu1 %v2806_v7  ;;  %2341 = vmatpush3.msra.mxu0 %v2824_v10 }
 0x36a   :  { %2373 = vmatprep.subr.mxu1 %v2500_v2  ;;  %2342 = vmatprep.subr.mxu0 %v2500_v2 }
 0x36b   :  { %2374 = vmatpush3.msra.mxu1 %v2815_v9  ;;  %2343 = vmatpush3.msra.mxu0 %v2833_v13 }
 0x36c   :  { %2375 = vmatprep.subr.mxu1 %v2500_v2  ;;  %2344 = vmatprep.subr.mxu0 %v2500_v2 }
 0x36d   :  { %2376 = vmatpush3.msra.mxu1 %v2824_v10  ;;  %2345 = vmatpush3.msra.mxu0 %v2842_v14 }
 0x36e   :  { %2377 = vmatprep.subr.mxu1 %v2500_v2  ;;  %2346 = vmatprep.subr.mxu0 %v2500_v2 }
 0x36f   :  { %2378 = vmatpush3.msra.mxu1 %v2833_v13  ;;  %2347 = vmatpush3.msra.mxu0 %v2851_v17 }
 0x370   :  { %2379 = vmatprep.subr.mxu1 %v2500_v2  ;;  %2348 = vmatprep.subr.mxu0 %v2500_v2 }
 0x371   :  { %2380 = vmatpush3.msra.mxu1 %v2842_v14  ;;  %2349 = vmatpush3.msra.mxu0 %v2860_v18 }
 0x372   :  { %2381 = vmatprep.subr.mxu1 %v2500_v2  ;;  %2350 = vmatprep.subr.mxu0 %v2500_v2 }
 0x373   :  { %2382 = vmatpush3.msra.mxu1 %v2851_v17  ;;  %2351 = vmatpush3.msra.mxu0 %v2869_v19 }
 0x374   :  { %2383 = vmatprep.subr.mxu1 %v2500_v2  ;;  %2352 = vmatprep.subr.mxu0 %v2500_v2 }
 0x375   :  { %2384 = vmatpush3.msra.mxu1 %v2860_v18  ;;  %2353 = vmatpush3.msra.mxu0 %v2878_v20 }
 0x376   :  { %2385 = vmatprep.subr.mxu1 %v2500_v2  ;;  %2354 = vmatprep.subr.mxu0 %v2500_v2 }
 0x377   :  { %2386 = vmatpush3.msra.mxu1 %v2869_v19  ;;  %2355 = vmatpush3.msra.mxu0 %v2887_v21 }
 0x378   :  { %2387 = vmatprep.subr.mxu1 %v2500_v2  ;;  %2356 = vmatprep.subr.mxu0 %v2500_v2 }
 0x379   :  { %2388 = vmatpush3.msra.mxu1 %v2878_v20  ;;  %2357 = vmatpush3.msra.mxu0 %v2896_v22 }
 0x37a   :  { %2389 = vmatprep.subr.mxu1 %v2500_v2  ;;  %2358 = vmatprep.subr.mxu0 %v2500_v2 }
 0x37b   :  { %2390 = vmatpush3.msra.mxu1 %v2887_v21  ;;  %2359 = vmatpush3.msra.mxu0 %v2905_v23 }
 0x37c   :  { %2391 = vmatprep.subr.mxu1 %v2500_v2  ;;  %2360 = vmatprep.subr.mxu0 %v2500_v2 }
 0x37d   :  { %2392 = vmatpush3.msra.mxu1 %v2896_v22  ;;  %2361 = vmatpush3.msra.mxu0 %v2911_v24 }
 0x37e   :  { %2393 = vmatprep.subr.mxu1 %v2500_v2  ;;  %2362 = vmatprep.mubr.msk.f32.mxu0 %vm2501_vm1, %v2500_v2 }
 0x37f   :  { %2394 = vmatpush3.msra.mxu1 %v2905_v23  ;;  %2397 = vmatprep.mubr.msk.f32.mxu1 %vm2501_vm1, %v2500_v2 }
 0x380   :  { %2395 = vmatprep.subr.mxu1 %v2500_v2  ;;  %2400 = vmatprep.subr.mxu0 %v1433_v6 }
 0x381   :  { %2396 = vmatpush3.msra.mxu1 %v2911_v24 }
 0x382   :  { %2435 = vmatprep.subr.mxu1 %v2500_v2 }
 0x41d   :  { %v2030_v3 = vpop.f32.mrf.mxu0 }
 0x41f   :  { %v2031_v1 = vpop.f32.mrf.mxu0 }
 0x420   :  { %v2032_v9 = vadd.f32 %v2031_v1, %v2030_v3  ;;  %v1272_v3 = vrot.slane %v1258_v41, %v2618_v12  ;;  %v1273_v1 = vcombine.high %v1265_v42, %v1265_v42 }
 0x421   :  { %v2033_v4 = vpop.f32.mrf.mxu0 }
 0x422   :  { %v2329_v7 = vpop.f32.mrf.mxu1 }
 0x423   :  { %v2034_v10 = vpop.f32.mrf.mxu0 }
 0x424   :  { %v2035_v13 = vadd.f32 %v2034_v10, %v2033_v4  ;;  %v963_v14 = vpop.f32.mrf.mxu1  ;;  %v1884_v4 = vrot.slane %v1257_v39, 9  ;;  %v1885_v10 = vrot.slane %v1265_v42, 9 }
 0x425   :  { %v964_v17 = vadd.f32 %v2032_v9, %v963_v14  ;;  %v1420_v9 = vld [vmem:[%s3480_s10 + $0x10] sm:$0xff]  ;;  %v1309_v14 = vmax.f32 %v1255_v36, %v1883_v48 }
 0x426   :  { %v969_v18 = vadd.f32 %v2329_v7, %v2035_v13  ;;  %v1307_v7 = vmax.f32 %v2630_v15, %v1881_v45  ;;  %v1308_v13 = vmax.f32 %v1256_v37, %v1882_v47 }
 0x427   :  { %v974_v19 = vmin.f32 %v964_v17, 0.0  ;;  %vm972_vm4 = vcmp.gt.f32.partialorder %v964_v17, 0.0 }
 0x428   :  { %v975_v20 = vmin.f32 %v969_v18, 0.0  ;;  %vm973_vm5 = vcmp.gt.f32.partialorder %v969_v18, 0.0 }
 0x429   :  { %v976_v21 = vmul.f32 1.442695, %v974_v19  ;;  %v1419_v19 = vld [vmem:[%s3480_s10 + $0x8] sm:$0xff] }
 0x42a   :  { %v978_v22 = vmul.f32 1.442695, %v975_v20  ;;  %v1887_v20 = vrot.slane %v1272_v3, 9 }
 0x42b   :  { %2491 = vpow2.f32 %v976_v21  ;;  %v1310_v21 = vmax.f32 %v1257_v39, %v1884_v4 }
 0x42c   :  { %2493 = vpow2.f32 %v978_v22  ;;  %v1311_v22 = vmax.f32 %v1265_v42, %v1885_v10 }
 0x438   :  { %v2492_v23 = vpop.eup %2491 }
 0x439   :  { %v2494_v24 = vpop.eup %2493  ;;  %v1871_v49 = vadd.f32 -1.0, %v2492_v23 }
 0x43a   :  { %v1872_v50 = vadd.f32 -1.0, %v2494_v24  ;;  %v1381_v24 = vrot.slane %v1307_v7, %v3026_v59 }
 0x43b   :  { %v3174_v51 = vsel %vm972_vm4, %v964_v17, %v1871_v49  ;;  %v1274_v17 = vcombine.high %v1272_v3, %v1272_v3  ;;  %v1418_v49 = vld [vmem:[%s3480_s10] sm:$0xff] }
 0x43c   :  { %v3176_v52 = vsel %vm973_vm5, %v969_v18, %v1872_v50  ;;  %v991_v53 = vmul.f32 %v3174_v51, %v3174_v51  ;;  %v1886_v18 = vrot.slane %v1273_v1, 9  ;;  %v1313_v50 = vmax.f32 %v1272_v3, %v1887_v20 }
 0x43d   :  { %v992_v54 = vmul.f32 %v3176_v52, %v3176_v52  ;;  %v984_v55 = vadd.f32 %v3176_v52, %v3174_v51  ;;  %v1888_v15 = vrot.slane %v1274_v17, 9 }
 0x43e   :  { %v1312_v23 = vmax.f32 %v1273_v1, %v1886_v18 }
 0x43f   :  { %v985_v56 = vrot.slane %v984_v55, 4  ;;  %v993_v57 = vadd.f32 %v992_v54, %v991_v53  ;;  %v1385_v53 = vrot.slane %v1308_v13, %v3026_v59  ;;  %v1389_v54 = vrot.slane %v1309_v14, %v3026_v59 }
 0x441   :  { %v986_v58 = vadd.f32 %v985_v56, %v984_v55  ;;  %v994_v60 = vrot.slane %v993_v57, 4  ;;  %v1314_v55 = vmax.f32 %v1274_v17, %v1888_v15  ;;  %v1393_v56 = vrot.slane %v1310_v21, %v3026_v59 }
 0x443   :  { %v987_v61 = vrot.slane %v986_v58, 2  ;;  %v995_v62 = vadd.f32 %v994_v60, %v993_v57  ;;  %v1397_v57 = vrot.slane %v1311_v22, %v3026_v59  ;;  %v1410_v60 = vsel %vm1355_vm6, %v1385_v53, %v1381_v24 }
 0x445   :  { %v988_v63 = vadd.f32 %v987_v61, %v986_v58  ;;  %v996_v0 = vrot.slane %v995_v62, 2  ;;  %v1401_v58 = vrot.slane %v1312_v23, %v3026_v59  ;;  %v1405_v61 = vrot.slane %v1313_v50, %v3026_v59 }
 0x447   :  { %v989_v5 = vrot.slane %v988_v63, 1  ;;  %v997_v25 = vadd.f32 %v996_v0, %v995_v62  ;;  %v1411_v62 = vsel %vm1357_vm7, %v1389_v54, %v1410_v60 }
 0x448   :  { %v1412_v0 = vsel %vm1359_vm8, %v1393_v56, %v1411_v62 }
 0x449   :  { %v990_v26 = vadd.f32 %v989_v5, %v988_v63  ;;  %v998_v27 = vrot.slane %v997_v25, 1  ;;  %v1409_v63 = vrot.slane %v1314_v55, %v3026_v59  ;;  %v1413_v5 = vsel %vm1361_vm9, %v1397_v57, %v1412_v0 }
 0x44b   :  { %2363 = vmatmul.mubr.f32.vlgmr.msra.gmra.mxu0 %v990_v26  ;;  %v999_v28 = vadd.f32 %v998_v27, %v997_v25  ;;  %v1414_v25 = vsel %vm1363_vm10, %v1401_v58, %v1413_v5 }
 0x44c   :  { %2401 = vmatpush3.msra.mxu0 %v1433_v6  ;;  %v1415_v26 = vsel %vm1365_vm11, %v1405_v61, %v1414_v25 }
 0x44d   :  { %2398 = vmatmul.mubr.f32.vlgmr.msra.gmra.mxu1 %v999_v28  ;;  %2402 = vmatprep.subr.mxu0 %v1432_v43  ;;  %v3263_v27 = vsel %vm1367_vm12, %v1409_v63, %v1415_v26  ;;  %v1708_v26 = vld [vmem:[%s3483_s3 + $0x178] sm:$0xff] }
 0x44e   :  { %2437 = vmatprep.mubr.msk.f32.mxu1 %vm2501_vm1, %v2500_v2  ;;  %2403 = vmatpush3.msra.mxu0 %v1432_v43 }
 0x44f   :  { %2404 = vmatprep.subr.mxu0 %v1431_v44 }
 0x450   :  { %2405 = vmatpush3.msra.mxu0 %v1431_v44 }
 0x451   :  { %2406 = vmatprep.subr.mxu0 %v1430_v8 }
 0x452   :  { %2407 = vmatpush3.msra.mxu0 %v1430_v8 }
 0x453   :  { %2408 = vmatprep.subr.mxu0 %v1429_v11 }
 0x454   :  { %2409 = vmatpush3.msra.mxu0 %v1429_v11 }
 0x455   :  { %2410 = vmatprep.subr.mxu0 %v1428_v29 }
 0x456   :  { %2411 = vmatpush3.msra.mxu0 %v1428_v29 }
 0x457   :  { %2412 = vmatprep.subr.mxu0 %v1427_v16 }
 0x458   :  { %2413 = vmatpush3.msra.mxu0 %v1427_v16  ;;  %v1144_v16 = vld [vmem:[%s3481_s7] sm:$0x1] }
 0x459   :  { %2414 = vmatprep.subr.mxu0 %v1426_v30 }
 0x45a   :  { %2415 = vmatpush3.msra.mxu0 %v1426_v30 }
 0x45b   :  { %2416 = vmatprep.subr.mxu0 %v1425_v31 }
 0x45c   :  { %2417 = vmatpush3.msra.mxu0 %v1425_v31 }
 0x45d   :  { %2418 = vmatprep.subr.mxu0 %v1424_v34 }
 0x45e   :  { %2419 = vmatpush3.msra.mxu0 %v1424_v34 }
 0x45f   :  { %2420 = vmatprep.subr.mxu0 %v1423_v35 }
 0x460   :  { %2421 = vmatpush3.msra.mxu0 %v1423_v35 }
 0x461   :  { %2422 = vmatprep.subr.mxu0 %v1422_v38 }
 0x462   :  { %2423 = vmatpush3.msra.mxu0 %v1422_v38 }
 0x463   :  { %2424 = vmatprep.subr.mxu0 %v1421_v46 }
 0x464   :  { %2425 = vmatpush3.msra.mxu0 %v1421_v46 }
 0x465   :  { %2426 = vmatprep.subr.mxu0 %v1420_v9 }
 0x466   :  { %2427 = vmatpush3.msra.mxu0 %v1420_v9 }
 0x467   :  { %2428 = vmatprep.subr.mxu0 %v1419_v19 }
 0x468   :  { %2429 = vmatpush3.msra.mxu0 %v1419_v19 }
 0x469   :  { %2430 = vmatprep.subr.mxu0 %v1418_v49 }
 0x46a   :  { %2431 = vmatpush3.msra.mxu0 %v1418_v49 }
 0x46b   :  { %2445 = vmatprep.subr.mxu0 %v2500_v2 }
 0x50b   :  { %v1066_v28 = vpop.f32.mrf.mxu0 }
 0x50c   :  { %v1140_v6 = vmul.f32 %v1066_v28, %v1066_v28 }
 0x50d   :  { %v2364_v43 = vpop.f32.mrf.mxu0  ;;  %v1136_v44 = vpop.f32.mrf.mxu1 }
 0x50e   :  { %v1141_v8 = vsub.f32 %v1136_v44, %v1140_v6  ;;  %v1705_v6 = vld [vmem:[%s3483_s3 + $0x160] sm:$0xff]  ;;  %v1704_v43 = vld [vmem:[%s3483_s3 + $0x158] sm:$0xff]  ;;  %v1703_v44 = vld [vmem:[%s3483_s3 + $0x150] sm:$0xff] }
 0x50f   :  { %v2399_v11 = vpop.f32.mrf.mxu1 }
 0x510   :  { %v1142_v29 = vadd.f32 1e-05, %v1141_v8  ;;  %v1702_v8 = vld [vmem:[%s3483_s3 + $0x148] sm:$0xff]  ;;  %v1701_v11 = vld [vmem:[%s3483_s3 + $0x140] sm:$0xff] }
 0x512   :  { %2495 = vrsqrt.f32 %v1142_v29  ;;  %v1700_v29 = vld [vmem:[%s3483_s3 + $0x138] sm:$0xff] }
 0x51f   :  { %v2496_v30 = vpop.eup %2495 }
 0x520   :  { %v1145_v31 = vmul.f32 %v2496_v30, %v1144_v16  ;;  %v1699_v16 = vld [vmem:[%s3483_s3 + $0x130] sm:$0xff]  ;;  %v1698_v30 = vld [vmem:[%s3483_s3 + $0x128] sm:$0xff] }
 0x522   :  { %v1147_v33 = vmul.f32 %v1145_v31, %v1066_v28  ;;  %v1152_v34 = vrot.slane %v1145_v31, %v3026_v59  ;;  %v1706_v28 = vld [vmem:[%s3483_s3 + $0x168] sm:$0xff]  ;;  %v1697_v31 = vld [vmem:[%s3483_s3 + $0x120] sm:$0xff] }
 0x524   :  { %v1148_v35 = vsub.f32 %v1146_v32, %v1147_v33  ;;  %v1153_v36 = vmul.f32 %v1152_v34, %v3174_v51  ;;  %v1154_v37 = vmul.f32 %v1152_v34, %v3176_v52 }
 0x526   :  { %v1159_v38 = vrot.slane %v1148_v35, %v3026_v59 }
 0x528   :  { %v1161_v39 = vadd.f32 %v1159_v38, %v1153_v36  ;;  %v1162_v40 = vadd.f32 %v1159_v38, %v1154_v37  ;;  %v1512_v37 = vld [vmem:[%s3484_s13] sm:$0xff]  ;;  %v1692_v38 = vld [vmem:[%s3483_s3 + $0xf8] sm:$0xff] }
 0x52a   :  { %v1165_v41 = vcombine.high %v1161_v39, %v1161_v39  ;;  %v1172_v42 = vrot.slane %v1161_v39, %v2618_v12  ;;  %v1182_v45 = vcombine.high %v1162_v40, %v1162_v40  ;;  %v1189_v46 = vrot.slane %v1162_v40, %v2618_v12  ;;  %v1676_v39 = vld [vmem:[%s3483_s3 + $0x78] sm:$0xff]  ;;  %v1691_v40 = vld [vmem:[%s3483_s3 + $0xf0] sm:$0xff] }
 0x52c   :  { %v1179_v47 = vrot.slane %v1165_v41, %v2618_v12  ;;  %v1180_v48 = vcombine.high %v1172_v42, %v1172_v42  ;;  %v1196_v3 = vrot.slane %v1182_v45, %v2618_v12  ;;  %v1197_v1 = vcombine.high %v1189_v46, %v1189_v46  ;;  %v1675_v41 = vld [vmem:[%s3483_s3 + $0x70] sm:$0xff]  ;;  %v1674_v45 = vld [vmem:[%s3483_s3 + $0x68] sm:$0xff] }
 0x52d   :  { %v1873_v4 = vrot.slane %v1172_v42, 9  ;;  %v1877_v51 = vrot.slane %v1189_v46, 9 }
 0x52e   :  { %v1181_v7 = vcombine.high %v1179_v47, %v1179_v47  ;;  %v1198_v52 = vcombine.high %v1196_v3, %v1196_v3  ;;  %v1874_v9 = vrot.slane %v1180_v48, 9  ;;  %v1875_v10 = vrot.slane %v1179_v47, 9 }
 0x52f   :  { %v1878_v13 = vrot.slane %v1197_v1, 9  ;;  %v1879_v14 = vrot.slane %v1196_v3, 9  ;;  %v1231_v17 = vmax.f32 %v1172_v42, %v1873_v4  ;;  %v1235_v22 = vmax.f32 %v1189_v46, %v1877_v51  ;;  %v1690_v42 = vld [vmem:[%s3483_s3 + $0xe8] sm:$0xff]  ;;  %v1689_v46 = vld [vmem:[%s3483_s3 + $0xe0] sm:$0xff]  ;;  %v1671_v4 = vld [vmem:[%s3483_s3 + $0x50] sm:$0xff] }
 0x530   :  { %v1876_v18 = vrot.slane %v1181_v7, 9  ;;  %v1880_v19 = vrot.slane %v1198_v52, 9  ;;  %v1232_v20 = vmax.f32 %v1180_v48, %v1874_v9  ;;  %v1233_v21 = vmax.f32 %v1179_v47, %v1875_v10  ;;  %v1673_v47 = vld [vmem:[%s3483_s3 + $0x60] sm:$0xff]  ;;  %v1688_v48 = vld [vmem:[%s3483_s3 + $0xd8] sm:$0xff]  ;;  %v1686_v51 = vld [vmem:[%s3483_s3 + $0xc8] sm:$0xff] }
 0x531   :  { %v1236_v15 = vmax.f32 %v1197_v1, %v1878_v13  ;;  %v1326_v24 = vrot.slane %v1231_v17, %v3026_v59  ;;  %v1237_v50 = vmax.f32 %v1196_v3, %v1879_v14  ;;  %v1342_v56 = vrot.slane %v1235_v22, %v3026_v59  ;;  %v1672_v3 = vld [vmem:[%s3483_s3 + $0x58] sm:$0xff]  ;;  %v1687_v1 = vld [vmem:[%s3483_s3 + $0xd0] sm:$0xff]  ;;  %v1669_v9 = vld [vmem:[%s3483_s3 + $0x40] sm:$0xff] }
 0x532   :  { %v1234_v23 = vmax.f32 %v1181_v7, %v1876_v18  ;;  %v1330_v12 = vrot.slane %v1232_v20, %v3026_v59  ;;  %v1334_v49 = vrot.slane %v1233_v21, %v3026_v59  ;;  %v1238_v53 = vmax.f32 %v1198_v52, %v1880_v19  ;;  %v1670_v7 = vld [vmem:[%s3483_s3 + $0x48] sm:$0xff]  ;;  %v1685_v52 = vld [vmem:[%s3483_s3 + $0xc0] sm:$0xff]  ;;  %v1684_v10 = vld [vmem:[%s3483_s3 + $0xb8] sm:$0xff] }
 0x533   :  { %v1346_v58 = vrot.slane %v1236_v15, %v3026_v59  ;;  %v1350_v61 = vrot.slane %v1237_v50, %v3026_v59  ;;  %v1668_v13 = vld [vmem:[%s3483_s3 + $0x38] sm:$0xff]  ;;  %v1683_v14 = vld [vmem:[%s3483_s3 + $0xb0] sm:$0xff]  ;;  %v1682_v18 = vld [vmem:[%s3483_s3 + $0xa8] sm:$0xff] }
 0x534   :  { %v1338_v54 = vrot.slane %v1234_v23, %v3026_v59  ;;  %v1356_v55 = vsel %vm1355_vm6, %v1330_v12, %v1326_v24  ;;  %v1354_v63 = vrot.slane %v1238_v53, %v3026_v59  ;;  %v1707_v59 = vld [vmem:[%s3483_s3 + $0x170] sm:$0xff]  ;;  %v1666_v19 = vld [vmem:[%s3483_s3 + $0x28] sm:$0xff]  ;;  %v1681_v20 = vld [vmem:[%s3483_s3 + $0xa0] sm:$0xff] }
 0x535   :  { %v1358_v57 = vsel %vm1357_vm7, %v1334_v49, %v1356_v55  ;;  %v1667_v17 = vld [vmem:[%s3483_s3 + $0x30] sm:$0xff]  ;;  %v1665_v21 = vld [vmem:[%s3483_s3 + $0x20] sm:$0xff]  ;;  %v1680_v22 = vld [vmem:[%s3483_s3 + $0x98] sm:$0xff] }
 0x536   :  { %v1360_v60 = vsel %vm1359_vm8, %v1338_v54, %v1358_v57  ;;  %v1664_v15 = vld [vmem:[%s3483_s3 + $0x18] sm:$0xff]  ;;  %v1679_v23 = vld [vmem:[%s3483_s3 + $0x90] sm:$0xff]  ;;  %v1678_v12 = vld [vmem:[%s3483_s3 + $0x88] sm:$0xff] }
 0x537   :  { %v1362_v62 = vsel %vm1361_vm9, %v1342_v56, %v1360_v60  ;;  %v1663_v24 = vld [vmem:[%s3483_s3 + $0x10] sm:$0xff]  ;;  %v1662_v49 = vld [vmem:[%s3483_s3 + $0x8] sm:$0xff]  ;;  %v1677_v50 = vld [vmem:[%s3483_s3 + $0x80] sm:$0xff] }
 0x538   :  { %v1364_v0 = vsel %vm1363_vm10, %v1346_v58, %v1362_v62  ;;  %v1696_v53 = vld [vmem:[%s3483_s3 + $0x118] sm:$0xff]  ;;  %v1661_v54 = vld [vmem:[%s3483_s3] sm:$0xff]  ;;  %v1695_v55 = vld [vmem:[%s3483_s3 + $0x110] sm:$0xff] }
 0x539   :  { %v1366_v5 = vsel %vm1365_vm11, %v1350_v61, %v1364_v0  ;;  %v1694_v56 = vld [vmem:[%s3483_s3 + $0x108] sm:$0xff]  ;;  %v1693_v57 = vld [vmem:[%s3483_s3 + $0x100] sm:$0xff] }
 0x53a   :  { %v1368_v25 = vsel %vm1367_vm12, %v1354_v63, %v1366_v5  ;;  %v1891_v5 = vld [vmem:[%s3486_s4] ss:$0 sm:$0xff] }
 0x53b   :  { %2432 = vmatprep.mubr.f32.mxu0 %v1368_v25 }
 0x53c   :  { %2433 = vmatmul.mubr.f32.vlgmr.msra.gmra.mxu0 %v3263_v27 }
 0x53d   :  { %2477 = vmatprep.mubr.msk.f32.mxu0 %vm2501_vm1, %v2500_v2  ;;  %2446 = vmatpush3.msra.mxu0 %v1708_v26 }
 0x53e   :  { %2447 = vmatprep.subr.mxu0 %v2500_v2 }
 0x53f   :  { %2448 = vmatpush3.msra.mxu0 %v1707_v59 }
 0x540   :  { %2449 = vmatprep.subr.mxu0 %v2500_v2 }
 0x541   :  { %2450 = vmatpush3.msra.mxu0 %v1706_v28 }
 0x542   :  { %2451 = vmatprep.subr.mxu0 %v2500_v2 }
 0x543   :  { %2452 = vmatpush3.msra.mxu0 %v1705_v6 }
 0x544   :  { %2453 = vmatprep.subr.mxu0 %v2500_v2 }
 0x545   :  { %2454 = vmatpush3.msra.mxu0 %v1704_v43 }
 0x546   :  { %2455 = vmatprep.subr.mxu0 %v2500_v2 }
 0x547   :  { %2456 = vmatpush3.msra.mxu0 %v1703_v44 }
 0x548   :  { %2457 = vmatprep.subr.mxu0 %v2500_v2 }
 0x549   :  { %2458 = vmatpush3.msra.mxu0 %v1702_v8 }
 0x54a   :  { %2459 = vmatprep.subr.mxu0 %v2500_v2 }
 0x54b   :  { %2460 = vmatpush3.msra.mxu0 %v1701_v11 }
 0x54c   :  { %2461 = vmatprep.subr.mxu0 %v2500_v2 }
 0x54d   :  { %2462 = vmatpush3.msra.mxu0 %v1700_v29 }
 0x54e   :  { %2463 = vmatprep.subr.mxu0 %v2500_v2 }
 0x54f   :  { %2464 = vmatpush3.msra.mxu0 %v1699_v16 }
 0x550   :  { %2465 = vmatprep.subr.mxu0 %v2500_v2 }
 0x551   :  { %2466 = vmatpush3.msra.mxu0 %v1698_v30 }
 0x552   :  { %2467 = vmatprep.subr.mxu0 %v2500_v2 }
 0x553   :  { %2468 = vmatpush3.msra.mxu0 %v1697_v31 }
 0x554   :  { %2469 = vmatprep.subr.mxu0 %v2500_v2 }
 0x555   :  { %2470 = vmatpush3.msra.mxu0 %v1696_v53 }
 0x556   :  { %2471 = vmatprep.subr.mxu0 %v2500_v2 }
 0x557   :  { %2472 = vmatpush3.msra.mxu0 %v1695_v55 }
 0x558   :  { %2473 = vmatprep.subr.mxu0 %v2500_v2 }
 0x559   :  { %2474 = vmatpush3.msra.mxu0 %v1694_v56 }
 0x55a   :  { %2475 = vmatprep.subr.mxu0 %v2500_v2 }
 0x55b   :  { %2476 = vmatpush3.msra.mxu0 %v1693_v57 }
 0x5fc   :  { %v2434_v32 = vpop.f32.mrf.mxu0 }
 0x5fd   :  { %v1510_v34 = vmax.f32 %v3263_v27, %v2434_v32  ;;  %v1587_v27 = vld [vmem:[%s3485_s14] sm:$0xff] }
 0x5fe   :  { %v1500_v33 = vpop.f32.mrf.mxu0 }
 0x5ff   :  { %v1509_v35 = vmax.f32 %v1368_v25, %v1500_v33 }
 0x601   :  { %v1511_v36 = vadd.f32 %v1510_v34, %v1509_v35 }
 0x603   :  { %2436 = vmatpush3.msra.mxu1 %v1511_v36 }
 0x604   :  { %2438 = vmatmul.mubr.msk.f32.vlgmr.msra.gmra.mxu1 %vm1513_vm13, %v1512_v37  ;;  %2440 = vmatprep.subr.mxu1 %v2500_v2 }
 0x605   :  { %2441 = vmatpush3.msra.mxu1 %v1511_v36  ;;  %2442 = vmatprep.mubr.msk.f32.mxu1 %vm2501_vm1, %v2500_v2 }
 0x606   :  { %2110 = vmatprep.subr.mxu1 %v1692_v38 }
 0x608   :  { %2443 = vmatmul.mubr.msk.f32.vlgmr.msra.gmra.mxu1 %vm1513_vm13, %v1587_v27 }
 0x609   :  { %1780 = vmatprep.mubr.f32.mxu1 %v1511_v36  ;;  %2111 = vmatpush3.msra.mxu1 %v1676_v39 }
 0x60a   :  { %2112 = vmatprep.subr.mxu1 %v1691_v40 }
 0x60b   :  { %2113 = vmatpush3.msra.mxu1 %v1675_v41 }
 0x60c   :  { %2114 = vmatprep.subr.mxu1 %v1690_v42 }
 0x60d   :  { %2115 = vmatpush3.msra.mxu1 %v1674_v45 }
 0x60e   :  { %2116 = vmatprep.subr.mxu1 %v1689_v46 }
 0x60f   :  { %2117 = vmatpush3.msra.mxu1 %v1673_v47 }
 0x610   :  { %2118 = vmatprep.subr.mxu1 %v1688_v48 }
 0x611   :  { %2119 = vmatpush3.msra.mxu1 %v1672_v3 }
 0x612   :  { %2120 = vmatprep.subr.mxu1 %v1687_v1 }
 0x613   :  { %2121 = vmatpush3.msra.mxu1 %v1671_v4 }
 0x614   :  { %2122 = vmatprep.subr.mxu1 %v1686_v51 }
 0x615   :  { %2123 = vmatpush3.msra.mxu1 %v1670_v7 }
 0x616   :  { %2124 = vmatprep.subr.mxu1 %v1685_v52 }
 0x617   :  { %2125 = vmatpush3.msra.mxu1 %v1669_v9 }
 0x618   :  { %2126 = vmatprep.subr.mxu1 %v1684_v10 }
 0x619   :  { %2127 = vmatpush3.msra.mxu1 %v1668_v13 }
 0x61a   :  { %2128 = vmatprep.subr.mxu1 %v1683_v14 }
 0x61b   :  { %2129 = vmatpush3.msra.mxu1 %v1667_v17 }
 0x61c   :  { %2130 = vmatprep.subr.mxu1 %v1682_v18 }
 0x61d   :  { %2131 = vmatpush3.msra.mxu1 %v1666_v19 }
 0x61e   :  { %2132 = vmatprep.subr.mxu1 %v1681_v20 }
 0x61f   :  { %2133 = vmatpush3.msra.mxu1 %v1665_v21 }
 0x620   :  { %2134 = vmatprep.subr.mxu1 %v1680_v22 }
 0x621   :  { %2135 = vmatpush3.msra.mxu1 %v1664_v15 }
 0x622   :  { %2136 = vmatprep.subr.mxu1 %v1679_v23 }
 0x623   :  { %2137 = vmatpush3.msra.mxu1 %v1663_v24 }
 0x624   :  { %2138 = vmatprep.subr.mxu1 %v1678_v12 }
 0x625   :  { %2139 = vmatpush3.msra.mxu1 %v1662_v49 }
 0x626   :  { %2140 = vmatprep.subr.mxu1 %v1677_v50 }
 0x627   :  { %2141 = vmatpush3.msra.mxu1 %v1661_v54 }
 0x6c4   :  { %v1583_v58 = vpop.f32.mrf.mxu1 }
 0x6c5   :  { %1781 = vmatmul.mubr.f32.vlgmr.msra.gmra.mxu1 %v1583_v58 }
 0x6c6   :  { %v2439_v60 = vpop.f32.mrf.mxu1 }
 0x6c8   :  { %v1657_v61 = vpop.f32.mrf.mxu1 }
 0x6c9   :  { %2478 = vmatmul.mubr.f32.vlgmr.msra.gmra.mxu0 %v1657_v61 }
 0x6ca   :  { %v2444_v62 = vpop.f32.mrf.mxu1 }
 0x785   :  { %v2142_v63 = vpop.f32.mrf.mxu1 }
 0x787   :  { %v2143_v0 = vpop.f32.mrf.mxu1 }
 0x788   :  { %v2144_v25 = vadd.f32 %v2143_v0, %v2142_v63 }
 0x789   :  { %v1852_v26 = vpop.f32.mrf.mxu0 }
 0x78a   :  { %v1783_v2 = vadd.f32 %v2144_v25, %v1891_v5 }
 0x78b   :  { %v2479_v59 = vpop.f32.mrf.mxu0 }
 0x78c   :  { %v1853_v28 = vadd.f32 %v1852_v26, %v1783_v2 }
 0x78e   :  { %1856 = vst [vmem:[%s3487_s15] sm:$0xff] %v1853_v28 }

</bundles_post_ra>
